<compile_context>
chip_gen: v6e
topology: v6e:2x2x1
jax: 0.10.0
libtpu: 0.0.40
codegen_flags: <defaults>
</compile_context>

<pallas_src>
import functools

import jax
import jax.numpy as jnp
import numpy as np
from jax.experimental import pallas as pl
from jax.experimental.pallas import tpu as pltpu

N, D, d = 16, 16, 8          # batch, extrinsic dim, intrinsic dim (small demo shapes)
BLOCK_N_MAX = 256            # cap per-block batch; demo (N=16) collapses to one grid step
TANGENT_BUNDLE_WEIGHT = 1.0  # module default
EPS = 1e-6                   # ridge on the Gram matrix (same as reference)


# ----------------------------------------------------------------------------
# Fused kernel: encoder/decoder matmuls, flat Kronecker-weight Gram matmul,
# batch-on-lanes unrolled Gauss-Jordan inverse, lane-dense projection /
# Frobenius term, single lane-dense (8, 128) partial-loss store.
# ----------------------------------------------------------------------------
def _tbae_fused_loss_kernel(x_ref, tgt_ref, we_ref, be_ref, wd_ref, bd_ref,
                            w2_ref, w3_ref, seli_ref, selj_ref, out_ref,
                            *, n_total, weight, eps):
    x = x_ref[...]                                   # (BN, D)
    bn, dim = x.shape
    d_int = we_ref.shape[1]

    # ---- encoder / decoder: two block-wide MXU matmuls ----
    z = jnp.tanh(jnp.dot(x, we_ref[...], preferred_element_type=jnp.float32)
                 + be_ref[...])                                        # (BN, d)
    xhat = jnp.tanh(jnp.dot(z, wd_ref[...], preferred_element_type=jnp.float32)
                    + bd_ref[...])                                     # (BN, D)

    # ---- reconstruction partial sum (nn.MSELoss numerator) ----
    dx = xhat - x
    recon_sum = jnp.sum(dx * dx)

    # ---- tangent projection without materializing J ----
    # J_n = diag(s_n) Wd^T  =>  G_n[k,l] = sum_i s_n[i]^2 wd[k,i] wd[l,i]
    s = 1.0 - xhat * xhat                            # (BN, D)
    s2 = s * s

    # G in batch-on-lanes layout via one flat MXU matmul (trans_b):
    # g_t[(k,l), n] = sum_i W2[(k,l), i] * s2[n, i]
    g_t = jax.lax.dot_general(
        w2_ref[...], s2, dimension_numbers=(((1,), (1,)), ((), ())),
        preferred_element_type=jnp.float32)          # (d*d, BN)
    g3 = g_t.reshape(d_int, d_int, bn)               # sublane split only; lane dim kept

    # ---- batched (d x d) SPD inverse via fully unrolled Gauss-Jordan,
    #      batch on lanes (full VPU lane width once BN >= 128) ----
    r_i = jax.lax.broadcasted_iota(jnp.int32, (d_int, d_int, 1), 0)
    c_i = jax.lax.broadcasted_iota(jnp.int32, (d_int, d_int, 1), 1)
    eye3 = (r_i == c_i).astype(jnp.float32)          # (d, d, 1) — built in-kernel (no captured const)
    a3 = g3 + eps * eye3                             # (d, d, BN)
    inv3 = jnp.broadcast_to(eye3, (d_int, d_int, bn))  # hoisted once per block
    rk_idx = jax.lax.broadcasted_iota(jnp.int32, (d_int, 1, 1), 0)

    for k in range(d_int):                           # d is static -> straight-line code
        colk = a3[:, k, :]                           # (d, BN)  A[:, k]
        piv = colk[k:k + 1, :]                       # (1, BN)
        inv_piv = 1.0 / piv                          # exact (per review)
        rowk_a = a3[k] * inv_piv                     # (d, BN)  A[k, :] / piv
        rowk_i = inv3[k] * inv_piv                   # (d, BN)
        a3 = jnp.where(rk_idx == k, rowk_a[None, :, :],
                       a3 - colk[:, None, :] * rowk_a[None, :, :])
        inv3 = jnp.where(rk_idx == k, rowk_i[None, :, :],
                         inv3 - colk[:, None, :] * rowk_i[None, :, :])

    inv_flat = inv3.reshape(d_int * d_int, bn)       # merge leading dims; lane dim kept

    # ---- M_flat[n,(i,j)] = sum_{(k,l)} Ginv_n[k,l] wd[k,i] wd[l,j]  (trans_a MXU matmul) ----
    m_flat = jax.lax.dot_general(
        inv_flat, w3_ref[...], dimension_numbers=(((0,), (0,)), ((), ())),
        preferred_element_type=jnp.float32)          # (BN, D*D), fully lane-dense

    # ---- P_flat = diag(s) M diag(s), lane-dense via selector matmuls ----
    s_rep_i = jnp.dot(s, seli_ref[...], preferred_element_type=jnp.float32)  # s[n,i] at (i,j)
    s_rep_j = jnp.dot(s, selj_ref[...], preferred_element_type=jnp.float32)  # s[n,j] at (i,j)
    p_flat = s_rep_i * m_flat * s_rep_j              # (BN, D*D)

    dp = p_flat - tgt_ref[...]                       # target pre-flattened to (BN, D*D)
    tan_sum = jnp.sum(dp * dp)                       # sum_n ||P_n - T_n||_F^2 (block)

    # per-block contribution to the total loss (summed over blocks in the wrapper)
    val = recon_sum * (1.0 / (n_total * dim)) + weight * tan_sum * (1.0 / n_total)
    out_ref[...] = jnp.broadcast_to(val, out_ref.shape)   # lane-dense (1, 8, 128) store


# ----------------------------------------------------------------------------
# Wrapper
# ----------------------------------------------------------------------------
def tbae_loss_pallas(x, target, we, be, wd, bd):
    n, dim = x.shape
    d_int = we.shape[1]

    # Demo N=16 -> single grid step.  For production N, cap at BLOCK_N_MAX and on
    # v7x prefer an even number of blocks so both TensorCores get work.
    block_n = n if n <= BLOCK_N_MAX else BLOCK_N_MAX
    assert n % block_n == 0, "batch must be a multiple of the block size"
    num_blocks = n // block_n

    # Host-side precompute (tiny, fused by XLA; free reshape for target):
    w2 = (wd[:, None, :] * wd[None, :, :]).reshape(d_int * d_int, dim)            # (d^2, D)
    w3 = (wd[:, None, :, None] * wd[None, :, None, :]).reshape(d_int * d_int,
                                                               dim * dim)         # (d^2, D^2)
    eye_d = jnp.eye(dim, dtype=jnp.float32)
    sel_i = jnp.kron(eye_d, jnp.ones((1, dim), jnp.float32))                      # (D, D^2)
    sel_j = jnp.kron(jnp.ones((1, dim), jnp.float32), eye_d)                      # (D, D^2)
    tgt_flat = target.reshape(n, dim * dim)                                       # free

    kernel = functools.partial(_tbae_fused_loss_kernel,
                               n_total=n, weight=TANGENT_BUNDLE_WEIGHT, eps=EPS)

    flops = (4 * n * dim * d_int                      # encoder + decoder matmuls
             + 2 * n * dim * d_int * d_int            # Gram (flat W2 matmul)
             + 2 * n * d_int * d_int * dim * dim      # M (flat W3 matmul)
             + 4 * n * dim * dim * dim                # selector matmuls
             + 6 * n * d_int ** 3                     # unrolled Gauss-Jordan
             + 10 * n * dim * dim)                    # lane-dense P / Frobenius term
    cost = pl.CostEstimate(
        flops=int(flops),
        transcendentals=int(n * (dim + d_int)),
        bytes_accessed=int(4 * (n * dim + n * dim * dim
                                + 3 * dim * d_int + dim + d_int
                                + d_int * d_int * (dim + dim * dim)
                                + 2 * dim * dim * dim
                                + num_blocks * 8 * 128)))

    partial_tiles = pl.pallas_call(
        kernel,
        grid=(num_blocks,),
        in_specs=[
            pl.BlockSpec((block_n, dim), lambda i: (i, 0)),              # x
            pl.BlockSpec((block_n, dim * dim), lambda i: (i, 0)),        # target (flattened, lane-dense)
            pl.BlockSpec((dim, d_int), lambda i: (0, 0)),                # We
            pl.BlockSpec((1, d_int), lambda i: (0, 0)),                  # be
            pl.BlockSpec((d_int, dim), lambda i: (0, 0)),                # Wd
            pl.BlockSpec((1, dim), lambda i: (0, 0)),                    # bd
            pl.BlockSpec((d_int * d_int, dim), lambda i: (0, 0)),        # W2  (Kronecker diag weights)
            pl.BlockSpec((d_int * d_int, dim * dim), lambda i: (0, 0)),  # W3  (Kronecker Wd x Wd)
            pl.BlockSpec((dim, dim * dim), lambda i: (0, 0)),            # SelI
            pl.BlockSpec((dim, dim * dim), lambda i: (0, 0)),            # SelJ
        ],
        out_specs=pl.BlockSpec((1, 8, 128), lambda i: (i, 0, 0)),
        out_shape=jax.ShapeDtypeStruct((num_blocks, 8, 128), jnp.float32),
        compiler_params=pltpu.CompilerParams(
            dimension_semantics=("parallel",),
            # TODO(synk): re-derive block_n / this limit per generation if D grows
            # (v7x VMEM is 64 MiB physical vs 128 MiB on v5e/v6e).
            vmem_limit_bytes=32 * 1024 * 1024),
        cost_estimate=cost,
    )(x, tgt_flat, we, be, wd, bd, w2, w3, sel_i, sel_j)

    # tiny final combine of per-block partial losses
    return jnp.sum(partial_tiles[:, 0, 0])


tbae_loss = jax.jit(tbae_loss_pallas)


# Pure-JAX reference for validation (independent formulation with jnp.linalg.inv).
def tbae_loss_ref(x, target, we, be, wd, bd):
    z = jnp.tanh(x @ we + be)
    xhat = jnp.tanh(z @ wd + bd)
    recon = jnp.mean((xhat - x) ** 2)
    s = 1.0 - xhat ** 2
    jac = s[:, :, None] * wd.T[None, :, :]
    gram = jnp.einsum('nik,nil->nkl', jac, jac)
    ginv = jnp.linalg.inv(gram + EPS * jnp.eye(wd.shape[0], dtype=jnp.float32)[None])
    proj = jnp.einsum('nik,nkl,njl->nij', jac, ginv, jac)
    tan = jnp.mean(jnp.sum((proj - target) ** 2, axis=(1, 2)))
    return recon + TANGENT_BUNDLE_WEIGHT * tan


if __name__ == "__main__":
    key = jax.random.PRNGKey(0)
    ks = jax.random.split(key, 6)
    x = jax.random.normal(ks[0], (N, D), jnp.float32)
    target = jax.random.normal(ks[1], (N, D, D), jnp.float32) * 0.1
    # Deterministic synthetic TBAE parameters (encoder D->d, decoder d->D).
    we = jax.random.normal(ks[2], (D, d), jnp.float32) / jnp.sqrt(float(D))
    be = jax.random.normal(ks[3], (1, d), jnp.float32) * 0.1
    wd = jax.random.normal(ks[4], (d, D), jnp.float32) / jnp.sqrt(float(d))
    bd = jax.random.normal(ks[5], (1, D), jnp.float32) * 0.1

    loss = jax.block_until_ready(tbae_loss(x, target, we, be, wd, bd))
    ref = tbae_loss_ref(x, target, we, be, wd, bd)
    np.testing.assert_allclose(np.asarray(loss), np.asarray(ref),
                               rtol=1e-2, atol=1e-3)
    print("KERNEL_OK")
</pallas_src>

<mosaic_0001>
module attributes {stable_mosaic.version = 11 : i64} {
  func.func @_tbae_fused_loss_kernel(%arg0: i32, %arg1: memref<16x16xf32, #tpu.memory_space<vmem>>, %arg2: memref<16x256xf32, #tpu.memory_space<vmem>>, %arg3: memref<16x8xf32, #tpu.memory_space<vmem>>, %arg4: memref<1x8xf32, #tpu.memory_space<vmem>>, %arg5: memref<8x16xf32, #tpu.memory_space<vmem>>, %arg6: memref<1x16xf32, #tpu.memory_space<vmem>>, %arg7: memref<64x16xf32, #tpu.memory_space<vmem>>, %arg8: memref<64x256xf32, #tpu.memory_space<vmem>>, %arg9: memref<16x256xf32, #tpu.memory_space<vmem>>, %arg10: memref<16x256xf32, #tpu.memory_space<vmem>>, %arg11: memref<1x8x128xf32, #tpu.memory_space<vmem>>) attributes {dimension_semantics = [#tpu.dimension_semantics<parallel>], iteration_bounds = array<i64: 1>, scalar_prefetch = 0 : i64, scratch_operands = 0 : i64, tpu.core_type = #tpu.core_type<tc>, window_params = [{transform_indices = @transform_0, window_bounds = array<i64: 16, 16>}, {transform_indices = @transform_1, window_bounds = array<i64: 16, 256>}, {pipeline_mode = #tpu.pipeline_mode<synchronous>, transform_indices = @transform_2, window_bounds = array<i64: 16, 8>}, {pipeline_mode = #tpu.pipeline_mode<synchronous>, transform_indices = @transform_3, window_bounds = array<i64: 1, 8>}, {pipeline_mode = #tpu.pipeline_mode<synchronous>, transform_indices = @transform_4, window_bounds = array<i64: 8, 16>}, {pipeline_mode = #tpu.pipeline_mode<synchronous>, transform_indices = @transform_5, window_bounds = array<i64: 1, 16>}, {pipeline_mode = #tpu.pipeline_mode<synchronous>, transform_indices = @transform_6, window_bounds = array<i64: 64, 16>}, {pipeline_mode = #tpu.pipeline_mode<synchronous>, transform_indices = @transform_7, window_bounds = array<i64: 64, 256>}, {pipeline_mode = #tpu.pipeline_mode<synchronous>, transform_indices = @transform_8, window_bounds = array<i64: 16, 256>}, {pipeline_mode = #tpu.pipeline_mode<synchronous>, transform_indices = @transform_9, window_bounds = array<i64: 16, 256>}, {transform_indices = @transform_10, window_bounds = array<i64: 1, 8, 128>}]} {
    %c0 = arith.constant 0 : index
    %c0_0 = arith.constant 0 : index
    %0 = vector.load %arg1[%c0, %c0_0] : memref<16x16xf32, #tpu.memory_space<vmem>>, vector<16x16xf32>
    %c0_1 = arith.constant 0 : index
    %c0_2 = arith.constant 0 : index
    %1 = vector.load %arg3[%c0_1, %c0_2] : memref<16x8xf32, #tpu.memory_space<vmem>>, vector<16x8xf32>
    %cst = arith.constant dense<0.000000e+00> : vector<16x8xf32>
    %2 = tpu.matmul %0, %1, %cst {dimension_numbers = #tpu.dot_dimension_numbers<[1], [0], [0], [1], [0, 0, 1, 1], [], []>} : vector<16x16xf32>, vector<16x8xf32>, vector<16x8xf32> -> vector<16x8xf32>
    %c0_3 = arith.constant 0 : index
    %c0_4 = arith.constant 0 : index
    %3 = vector.load %arg4[%c0_3, %c0_4] : memref<1x8xf32, #tpu.memory_space<vmem>>, vector<1x8xf32>
    %4 = vector.broadcast %3 : vector<1x8xf32> to vector<16x8xf32>
    %5 = arith.addf %2, %4 : vector<16x8xf32>
    %6 = math.tanh %5 : vector<16x8xf32>
    %c0_5 = arith.constant 0 : index
    %c0_6 = arith.constant 0 : index
    %7 = vector.load %arg5[%c0_5, %c0_6] : memref<8x16xf32, #tpu.memory_space<vmem>>, vector<8x16xf32>
    %cst_7 = arith.constant dense<0.000000e+00> : vector<16x16xf32>
    %8 = tpu.matmul %6, %7, %cst_7 {dimension_numbers = #tpu.dot_dimension_numbers<[1], [0], [0], [1], [0, 0, 1, 1], [], []>} : vector<16x8xf32>, vector<8x16xf32>, vector<16x16xf32> -> vector<16x16xf32>
    %c0_8 = arith.constant 0 : index
    %c0_9 = arith.constant 0 : index
    %9 = vector.load %arg6[%c0_8, %c0_9] : memref<1x16xf32, #tpu.memory_space<vmem>>, vector<1x16xf32>
    %10 = vector.broadcast %9 : vector<1x16xf32> to vector<16x16xf32>
    %11 = arith.addf %8, %10 : vector<16x16xf32>
    %12 = math.tanh %11 : vector<16x16xf32>
    %13 = arith.subf %12, %0 : vector<16x16xf32>
    %14 = arith.mulf %13, %13 : vector<16x16xf32>
    %15 = vector.shape_cast %14 : vector<16x16xf32> to vector<1x16x16xf32>
    %cst_10 = arith.constant dense<0.000000e+00> : vector<1xf32>
    %16 = vector.multi_reduction <add>, %15, %cst_10 [1, 2] : vector<1x16x16xf32> to vector<1xf32>
    %17 = vector.shape_cast %16 : vector<1xf32> to vector<1x1x1xf32>
    %18 = vector.extract %17[0, 0, 0] : f32 from vector<1x1x1xf32>
    %19 = arith.mulf %12, %12 : vector<16x16xf32>
    %cst_11 = arith.constant 1.000000e+00 : f32
    %20 = vector.broadcast %cst_11 : f32 to vector<16x16xf32>
    %21 = arith.subf %20, %19 : vector<16x16xf32>
    %22 = arith.mulf %21, %21 : vector<16x16xf32>
    %c0_12 = arith.constant 0 : index
    %c0_13 = arith.constant 0 : index
    %23 = vector.load %arg7[%c0_12, %c0_13] : memref<64x16xf32, #tpu.memory_space<vmem>>, vector<64x16xf32>
    %cst_14 = arith.constant dense<0.000000e+00> : vector<64x16xf32>
    %24 = tpu.matmul %23, %22, %cst_14 {dimension_numbers = #tpu.dot_dimension_numbers<[1], [1], [0], [0], [0, 0, 1, 0], [], []>} : vector<64x16xf32>, vector<16x16xf32>, vector<64x16xf32> -> vector<64x16xf32>
    %25 = vector.shape_cast %24 : vector<64x16xf32> to vector<8x8x16xf32>
    %26 = tpu.iota {dimensions = array<i32: 0>} : vector<8x8x1xi32>
    %27 = tpu.iota {dimensions = array<i32: 1>} : vector<8x8x1xi32>
    %28 = arith.cmpi eq, %26, %27 : vector<8x8x1xi32>
    %29 = arith.extui %28 : vector<8x8x1xi1> to vector<8x8x1xi32>
    %30 = arith.sitofp %29 : vector<8x8x1xi32> to vector<8x8x1xf32>
    %cst_15 = arith.constant 9.99999997E-7 : f32
    %31 = vector.broadcast %cst_15 : f32 to vector<8x8x1xf32>
    %32 = arith.mulf %31, %30 : vector<8x8x1xf32>
    %33 = vector.broadcast %32 : vector<8x8x1xf32> to vector<8x8x16xf32>
    %34 = arith.addf %25, %33 : vector<8x8x16xf32>
    %35 = vector.shape_cast %30 : vector<8x8x1xf32> to vector<8x8x1xf32>
    %36 = vector.broadcast %35 : vector<8x8x1xf32> to vector<8x8x16xf32>
    %37 = tpu.iota {dimensions = array<i32: 0>} : vector<8x1x1xi32>
    %38 = vector.extract_strided_slice %34 {offsets = [0, 0, 0], sizes = [8, 1, 16], strides = [1, 1, 1]} : vector<8x8x16xf32> to vector<8x1x16xf32>
    %39 = vector.shape_cast %38 : vector<8x1x16xf32> to vector<8x16xf32>
    %40 = vector.extract_strided_slice %39 {offsets = [0, 0], sizes = [1, 16], strides = [1, 1]} : vector<8x16xf32> to vector<1x16xf32>
    %cst_16 = arith.constant 1.000000e+00 : f32
    %41 = vector.broadcast %cst_16 : f32 to vector<1x16xf32>
    %42 = arith.divf %41, %40 : vector<1x16xf32>
    %43 = vector.extract_strided_slice %34 {offsets = [0, 0, 0], sizes = [1, 8, 16], strides = [1, 1, 1]} : vector<8x8x16xf32> to vector<1x8x16xf32>
    %44 = vector.shape_cast %43 : vector<1x8x16xf32> to vector<8x16xf32>
    %45 = vector.broadcast %42 : vector<1x16xf32> to vector<8x16xf32>
    %46 = arith.mulf %44, %45 : vector<8x16xf32>
    %47 = vector.extract_strided_slice %36 {offsets = [0, 0, 0], sizes = [1, 8, 16], strides = [1, 1, 1]} : vector<8x8x16xf32> to vector<1x8x16xf32>
    %48 = vector.shape_cast %47 : vector<1x8x16xf32> to vector<8x16xf32>
    %49 = vector.broadcast %42 : vector<1x16xf32> to vector<8x16xf32>
    %50 = arith.mulf %48, %49 : vector<8x16xf32>
    %c0_i32 = arith.constant 0 : i32
    %51 = vector.broadcast %c0_i32 : i32 to vector<8x1x1xi32>
    %52 = arith.cmpi eq, %37, %51 : vector<8x1x1xi32>
    %53 = vector.shape_cast %46 : vector<8x16xf32> to vector<1x8x16xf32>
    %54 = vector.shape_cast %39 : vector<8x16xf32> to vector<8x1x16xf32>
    %55 = vector.shape_cast %46 : vector<8x16xf32> to vector<1x8x16xf32>
    %56 = vector.broadcast %54 : vector<8x1x16xf32> to vector<8x8x16xf32>
    %57 = vector.broadcast %55 : vector<1x8x16xf32> to vector<8x8x16xf32>
    %58 = arith.mulf %56, %57 : vector<8x8x16xf32>
    %59 = arith.subf %34, %58 : vector<8x8x16xf32>
    %60 = vector.shape_cast %52 : vector<8x1x1xi1> to vector<8x1x1xi1>
    %61 = vector.broadcast %60 : vector<8x1x1xi1> to vector<8x8x16xi1>
    %62 = vector.shape_cast %53 : vector<1x8x16xf32> to vector<1x8x16xf32>
    %63 = vector.broadcast %62 : vector<1x8x16xf32> to vector<8x8x16xf32>
    %64 = arith.select %61, %63, %59 : vector<8x8x16xi1>, vector<8x8x16xf32>
    %c0_i32_17 = arith.constant 0 : i32
    %65 = vector.broadcast %c0_i32_17 : i32 to vector<8x1x1xi32>
    %66 = arith.cmpi eq, %37, %65 : vector<8x1x1xi32>
    %67 = vector.shape_cast %50 : vector<8x16xf32> to vector<1x8x16xf32>
    %68 = vector.shape_cast %39 : vector<8x16xf32> to vector<8x1x16xf32>
    %69 = vector.shape_cast %50 : vector<8x16xf32> to vector<1x8x16xf32>
    %70 = vector.broadcast %68 : vector<8x1x16xf32> to vector<8x8x16xf32>
    %71 = vector.broadcast %69 : vector<1x8x16xf32> to vector<8x8x16xf32>
    %72 = arith.mulf %70, %71 : vector<8x8x16xf32>
    %73 = arith.subf %36, %72 : vector<8x8x16xf32>
    %74 = vector.shape_cast %66 : vector<8x1x1xi1> to vector<8x1x1xi1>
    %75 = vector.broadcast %74 : vector<8x1x1xi1> to vector<8x8x16xi1>
    %76 = vector.shape_cast %67 : vector<1x8x16xf32> to vector<1x8x16xf32>
    %77 = vector.broadcast %76 : vector<1x8x16xf32> to vector<8x8x16xf32>
    %78 = arith.select %75, %77, %73 : vector<8x8x16xi1>, vector<8x8x16xf32>
    %79 = vector.extract_strided_slice %64 {offsets = [0, 1, 0], sizes = [8, 1, 16], strides = [1, 1, 1]} : vector<8x8x16xf32> to vector<8x1x16xf32>
    %80 = vector.shape_cast %79 : vector<8x1x16xf32> to vector<8x16xf32>
    %81 = vector.extract_strided_slice %80 {offsets = [1, 0], sizes = [1, 16], strides = [1, 1]} : vector<8x16xf32> to vector<1x16xf32>
    %cst_18 = arith.constant 1.000000e+00 : f32
    %82 = vector.broadcast %cst_18 : f32 to vector<1x16xf32>
    %83 = arith.divf %82, %81 : vector<1x16xf32>
    %84 = vector.extract_strided_slice %64 {offsets = [1, 0, 0], sizes = [1, 8, 16], strides = [1, 1, 1]} : vector<8x8x16xf32> to vector<1x8x16xf32>
    %85 = vector.shape_cast %84 : vector<1x8x16xf32> to vector<8x16xf32>
    %86 = vector.broadcast %83 : vector<1x16xf32> to vector<8x16xf32>
    %87 = arith.mulf %85, %86 : vector<8x16xf32>
    %88 = vector.extract_strided_slice %78 {offsets = [1, 0, 0], sizes = [1, 8, 16], strides = [1, 1, 1]} : vector<8x8x16xf32> to vector<1x8x16xf32>
    %89 = vector.shape_cast %88 : vector<1x8x16xf32> to vector<8x16xf32>
    %90 = vector.broadcast %83 : vector<1x16xf32> to vector<8x16xf32>
    %91 = arith.mulf %89, %90 : vector<8x16xf32>
    %c1_i32 = arith.constant 1 : i32
    %92 = vector.broadcast %c1_i32 : i32 to vector<8x1x1xi32>
    %93 = arith.cmpi eq, %37, %92 : vector<8x1x1xi32>
    %94 = vector.shape_cast %87 : vector<8x16xf32> to vector<1x8x16xf32>
    %95 = vector.shape_cast %80 : vector<8x16xf32> to vector<8x1x16xf32>
    %96 = vector.shape_cast %87 : vector<8x16xf32> to vector<1x8x16xf32>
    %97 = vector.broadcast %95 : vector<8x1x16xf32> to vector<8x8x16xf32>
    %98 = vector.broadcast %96 : vector<1x8x16xf32> to vector<8x8x16xf32>
    %99 = arith.mulf %97, %98 : vector<8x8x16xf32>
    %100 = arith.subf %64, %99 : vector<8x8x16xf32>
    %101 = vector.shape_cast %93 : vector<8x1x1xi1> to vector<8x1x1xi1>
    %102 = vector.broadcast %101 : vector<8x1x1xi1> to vector<8x8x16xi1>
    %103 = vector.shape_cast %94 : vector<1x8x16xf32> to vector<1x8x16xf32>
    %104 = vector.broadcast %103 : vector<1x8x16xf32> to vector<8x8x16xf32>
    %105 = arith.select %102, %104, %100 : vector<8x8x16xi1>, vector<8x8x16xf32>
    %c1_i32_19 = arith.constant 1 : i32
    %106 = vector.broadcast %c1_i32_19 : i32 to vector<8x1x1xi32>
    %107 = arith.cmpi eq, %37, %106 : vector<8x1x1xi32>
    %108 = vector.shape_cast %91 : vector<8x16xf32> to vector<1x8x16xf32>
    %109 = vector.shape_cast %80 : vector<8x16xf32> to vector<8x1x16xf32>
    %110 = vector.shape_cast %91 : vector<8x16xf32> to vector<1x8x16xf32>
    %111 = vector.broadcast %109 : vector<8x1x16xf32> to vector<8x8x16xf32>
    %112 = vector.broadcast %110 : vector<1x8x16xf32> to vector<8x8x16xf32>
    %113 = arith.mulf %111, %112 : vector<8x8x16xf32>
    %114 = arith.subf %78, %113 : vector<8x8x16xf32>
    %115 = vector.shape_cast %107 : vector<8x1x1xi1> to vector<8x1x1xi1>
    %116 = vector.broadcast %115 : vector<8x1x1xi1> to vector<8x8x16xi1>
    %117 = vector.shape_cast %108 : vector<1x8x16xf32> to vector<1x8x16xf32>
    %118 = vector.broadcast %117 : vector<1x8x16xf32> to vector<8x8x16xf32>
    %119 = arith.select %116, %118, %114 : vector<8x8x16xi1>, vector<8x8x16xf32>
    %120 = vector.extract_strided_slice %105 {offsets = [0, 2, 0], sizes = [8, 1, 16], strides = [1, 1, 1]} : vector<8x8x16xf32> to vector<8x1x16xf32>
    %121 = vector.shape_cast %120 : vector<8x1x16xf32> to vector<8x16xf32>
    %122 = vector.extract_strided_slice %121 {offsets = [2, 0], sizes = [1, 16], strides = [1, 1]} : vector<8x16xf32> to vector<1x16xf32>
    %cst_20 = arith.constant 1.000000e+00 : f32
    %123 = vector.broadcast %cst_20 : f32 to vector<1x16xf32>
    %124 = arith.divf %123, %122 : vector<1x16xf32>
    %125 = vector.extract_strided_slice %105 {offsets = [2, 0, 0], sizes = [1, 8, 16], strides = [1, 1, 1]} : vector<8x8x16xf32> to vector<1x8x16xf32>
    %126 = vector.shape_cast %125 : vector<1x8x16xf32> to vector<8x16xf32>
    %127 = vector.broadcast %124 : vector<1x16xf32> to vector<8x16xf32>
    %128 = arith.mulf %126, %127 : vector<8x16xf32>
    %129 = vector.extract_strided_slice %119 {offsets = [2, 0, 0], sizes = [1, 8, 16], strides = [1, 1, 1]} : vector<8x8x16xf32> to vector<1x8x16xf32>
    %130 = vector.shape_cast %129 : vector<1x8x16xf32> to vector<8x16xf32>
    %131 = vector.broadcast %124 : vector<1x16xf32> to vector<8x16xf32>
    %132 = arith.mulf %130, %131 : vector<8x16xf32>
    %c2_i32 = arith.constant 2 : i32
    %133 = vector.broadcast %c2_i32 : i32 to vector<8x1x1xi32>
    %134 = arith.cmpi eq, %37, %133 : vector<8x1x1xi32>
    %135 = vector.shape_cast %128 : vector<8x16xf32> to vector<1x8x16xf32>
    %136 = vector.shape_cast %121 : vector<8x16xf32> to vector<8x1x16xf32>
    %137 = vector.shape_cast %128 : vector<8x16xf32> to vector<1x8x16xf32>
    %138 = vector.broadcast %136 : vector<8x1x16xf32> to vector<8x8x16xf32>
    %139 = vector.broadcast %137 : vector<1x8x16xf32> to vector<8x8x16xf32>
    %140 = arith.mulf %138, %139 : vector<8x8x16xf32>
    %141 = arith.subf %105, %140 : vector<8x8x16xf32>
    %142 = vector.shape_cast %134 : vector<8x1x1xi1> to vector<8x1x1xi1>
    %143 = vector.broadcast %142 : vector<8x1x1xi1> to vector<8x8x16xi1>
    %144 = vector.shape_cast %135 : vector<1x8x16xf32> to vector<1x8x16xf32>
    %145 = vector.broadcast %144 : vector<1x8x16xf32> to vector<8x8x16xf32>
    %146 = arith.select %143, %145, %141 : vector<8x8x16xi1>, vector<8x8x16xf32>
    %c2_i32_21 = arith.constant 2 : i32
    %147 = vector.broadcast %c2_i32_21 : i32 to vector<8x1x1xi32>
    %148 = arith.cmpi eq, %37, %147 : vector<8x1x1xi32>
    %149 = vector.shape_cast %132 : vector<8x16xf32> to vector<1x8x16xf32>
    %150 = vector.shape_cast %121 : vector<8x16xf32> to vector<8x1x16xf32>
    %151 = vector.shape_cast %132 : vector<8x16xf32> to vector<1x8x16xf32>
    %152 = vector.broadcast %150 : vector<8x1x16xf32> to vector<8x8x16xf32>
    %153 = vector.broadcast %151 : vector<1x8x16xf32> to vector<8x8x16xf32>
    %154 = arith.mulf %152, %153 : vector<8x8x16xf32>
    %155 = arith.subf %119, %154 : vector<8x8x16xf32>
    %156 = vector.shape_cast %148 : vector<8x1x1xi1> to vector<8x1x1xi1>
    %157 = vector.broadcast %156 : vector<8x1x1xi1> to vector<8x8x16xi1>
    %158 = vector.shape_cast %149 : vector<1x8x16xf32> to vector<1x8x16xf32>
    %159 = vector.broadcast %158 : vector<1x8x16xf32> to vector<8x8x16xf32>
    %160 = arith.select %157, %159, %155 : vector<8x8x16xi1>, vector<8x8x16xf32>
    %161 = vector.extract_strided_slice %146 {offsets = [0, 3, 0], sizes = [8, 1, 16], strides = [1, 1, 1]} : vector<8x8x16xf32> to vector<8x1x16xf32>
    %162 = vector.shape_cast %161 : vector<8x1x16xf32> to vector<8x16xf32>
    %163 = vector.extract_strided_slice %162 {offsets = [3, 0], sizes = [1, 16], strides = [1, 1]} : vector<8x16xf32> to vector<1x16xf32>
    %cst_22 = arith.constant 1.000000e+00 : f32
    %164 = vector.broadcast %cst_22 : f32 to vector<1x16xf32>
    %165 = arith.divf %164, %163 : vector<1x16xf32>
    %166 = vector.extract_strided_slice %146 {offsets = [3, 0, 0], sizes = [1, 8, 16], strides = [1, 1, 1]} : vector<8x8x16xf32> to vector<1x8x16xf32>
    %167 = vector.shape_cast %166 : vector<1x8x16xf32> to vector<8x16xf32>
    %168 = vector.broadcast %165 : vector<1x16xf32> to vector<8x16xf32>
    %169 = arith.mulf %167, %168 : vector<8x16xf32>
    %170 = vector.extract_strided_slice %160 {offsets = [3, 0, 0], sizes = [1, 8, 16], strides = [1, 1, 1]} : vector<8x8x16xf32> to vector<1x8x16xf32>
    %171 = vector.shape_cast %170 : vector<1x8x16xf32> to vector<8x16xf32>
    %172 = vector.broadcast %165 : vector<1x16xf32> to vector<8x16xf32>
    %173 = arith.mulf %171, %172 : vector<8x16xf32>
    %c3_i32 = arith.constant 3 : i32
    %174 = vector.broadcast %c3_i32 : i32 to vector<8x1x1xi32>
    %175 = arith.cmpi eq, %37, %174 : vector<8x1x1xi32>
    %176 = vector.shape_cast %169 : vector<8x16xf32> to vector<1x8x16xf32>
    %177 = vector.shape_cast %162 : vector<8x16xf32> to vector<8x1x16xf32>
    %178 = vector.shape_cast %169 : vector<8x16xf32> to vector<1x8x16xf32>
    %179 = vector.broadcast %177 : vector<8x1x16xf32> to vector<8x8x16xf32>
    %180 = vector.broadcast %178 : vector<1x8x16xf32> to vector<8x8x16xf32>
    %181 = arith.mulf %179, %180 : vector<8x8x16xf32>
    %182 = arith.subf %146, %181 : vector<8x8x16xf32>
    %183 = vector.shape_cast %175 : vector<8x1x1xi1> to vector<8x1x1xi1>
    %184 = vector.broadcast %183 : vector<8x1x1xi1> to vector<8x8x16xi1>
    %185 = vector.shape_cast %176 : vector<1x8x16xf32> to vector<1x8x16xf32>
    %186 = vector.broadcast %185 : vector<1x8x16xf32> to vector<8x8x16xf32>
    %187 = arith.select %184, %186, %182 : vector<8x8x16xi1>, vector<8x8x16xf32>
    %c3_i32_23 = arith.constant 3 : i32
    %188 = vector.broadcast %c3_i32_23 : i32 to vector<8x1x1xi32>
    %189 = arith.cmpi eq, %37, %188 : vector<8x1x1xi32>
    %190 = vector.shape_cast %173 : vector<8x16xf32> to vector<1x8x16xf32>
    %191 = vector.shape_cast %162 : vector<8x16xf32> to vector<8x1x16xf32>
    %192 = vector.shape_cast %173 : vector<8x16xf32> to vector<1x8x16xf32>
    %193 = vector.broadcast %191 : vector<8x1x16xf32> to vector<8x8x16xf32>
    %194 = vector.broadcast %192 : vector<1x8x16xf32> to vector<8x8x16xf32>
    %195 = arith.mulf %193, %194 : vector<8x8x16xf32>
    %196 = arith.subf %160, %195 : vector<8x8x16xf32>
    %197 = vector.shape_cast %189 : vector<8x1x1xi1> to vector<8x1x1xi1>
    %198 = vector.broadcast %197 : vector<8x1x1xi1> to vector<8x8x16xi1>
    %199 = vector.shape_cast %190 : vector<1x8x16xf32> to vector<1x8x16xf32>
    %200 = vector.broadcast %199 : vector<1x8x16xf32> to vector<8x8x16xf32>
    %201 = arith.select %198, %200, %196 : vector<8x8x16xi1>, vector<8x8x16xf32>
    %202 = vector.extract_strided_slice %187 {offsets = [0, 4, 0], sizes = [8, 1, 16], strides = [1, 1, 1]} : vector<8x8x16xf32> to vector<8x1x16xf32>
    %203 = vector.shape_cast %202 : vector<8x1x16xf32> to vector<8x16xf32>
    %204 = vector.extract_strided_slice %203 {offsets = [4, 0], sizes = [1, 16], strides = [1, 1]} : vector<8x16xf32> to vector<1x16xf32>
    %cst_24 = arith.constant 1.000000e+00 : f32
    %205 = vector.broadcast %cst_24 : f32 to vector<1x16xf32>
    %206 = arith.divf %205, %204 : vector<1x16xf32>
    %207 = vector.extract_strided_slice %187 {offsets = [4, 0, 0], sizes = [1, 8, 16], strides = [1, 1, 1]} : vector<8x8x16xf32> to vector<1x8x16xf32>
    %208 = vector.shape_cast %207 : vector<1x8x16xf32> to vector<8x16xf32>
    %209 = vector.broadcast %206 : vector<1x16xf32> to vector<8x16xf32>
    %210 = arith.mulf %208, %209 : vector<8x16xf32>
    %211 = vector.extract_strided_slice %201 {offsets = [4, 0, 0], sizes = [1, 8, 16], strides = [1, 1, 1]} : vector<8x8x16xf32> to vector<1x8x16xf32>
    %212 = vector.shape_cast %211 : vector<1x8x16xf32> to vector<8x16xf32>
    %213 = vector.broadcast %206 : vector<1x16xf32> to vector<8x16xf32>
    %214 = arith.mulf %212, %213 : vector<8x16xf32>
    %c4_i32 = arith.constant 4 : i32
    %215 = vector.broadcast %c4_i32 : i32 to vector<8x1x1xi32>
    %216 = arith.cmpi eq, %37, %215 : vector<8x1x1xi32>
    %217 = vector.shape_cast %210 : vector<8x16xf32> to vector<1x8x16xf32>
    %218 = vector.shape_cast %203 : vector<8x16xf32> to vector<8x1x16xf32>
    %219 = vector.shape_cast %210 : vector<8x16xf32> to vector<1x8x16xf32>
    %220 = vector.broadcast %218 : vector<8x1x16xf32> to vector<8x8x16xf32>
    %221 = vector.broadcast %219 : vector<1x8x16xf32> to vector<8x8x16xf32>
    %222 = arith.mulf %220, %221 : vector<8x8x16xf32>
    %223 = arith.subf %187, %222 : vector<8x8x16xf32>
    %224 = vector.shape_cast %216 : vector<8x1x1xi1> to vector<8x1x1xi1>
    %225 = vector.broadcast %224 : vector<8x1x1xi1> to vector<8x8x16xi1>
    %226 = vector.shape_cast %217 : vector<1x8x16xf32> to vector<1x8x16xf32>
    %227 = vector.broadcast %226 : vector<1x8x16xf32> to vector<8x8x16xf32>
    %228 = arith.select %225, %227, %223 : vector<8x8x16xi1>, vector<8x8x16xf32>
    %c4_i32_25 = arith.constant 4 : i32
    %229 = vector.broadcast %c4_i32_25 : i32 to vector<8x1x1xi32>
    %230 = arith.cmpi eq, %37, %229 : vector<8x1x1xi32>
    %231 = vector.shape_cast %214 : vector<8x16xf32> to vector<1x8x16xf32>
    %232 = vector.shape_cast %203 : vector<8x16xf32> to vector<8x1x16xf32>
    %233 = vector.shape_cast %214 : vector<8x16xf32> to vector<1x8x16xf32>
    %234 = vector.broadcast %232 : vector<8x1x16xf32> to vector<8x8x16xf32>
    %235 = vector.broadcast %233 : vector<1x8x16xf32> to vector<8x8x16xf32>
    %236 = arith.mulf %234, %235 : vector<8x8x16xf32>
    %237 = arith.subf %201, %236 : vector<8x8x16xf32>
    %238 = vector.shape_cast %230 : vector<8x1x1xi1> to vector<8x1x1xi1>
    %239 = vector.broadcast %238 : vector<8x1x1xi1> to vector<8x8x16xi1>
    %240 = vector.shape_cast %231 : vector<1x8x16xf32> to vector<1x8x16xf32>
    %241 = vector.broadcast %240 : vector<1x8x16xf32> to vector<8x8x16xf32>
    %242 = arith.select %239, %241, %237 : vector<8x8x16xi1>, vector<8x8x16xf32>
    %243 = vector.extract_strided_slice %228 {offsets = [0, 5, 0], sizes = [8, 1, 16], strides = [1, 1, 1]} : vector<8x8x16xf32> to vector<8x1x16xf32>
    %244 = vector.shape_cast %243 : vector<8x1x16xf32> to vector<8x16xf32>
    %245 = vector.extract_strided_slice %244 {offsets = [5, 0], sizes = [1, 16], strides = [1, 1]} : vector<8x16xf32> to vector<1x16xf32>
    %cst_26 = arith.constant 1.000000e+00 : f32
    %246 = vector.broadcast %cst_26 : f32 to vector<1x16xf32>
    %247 = arith.divf %246, %245 : vector<1x16xf32>
    %248 = vector.extract_strided_slice %228 {offsets = [5, 0, 0], sizes = [1, 8, 16], strides = [1, 1, 1]} : vector<8x8x16xf32> to vector<1x8x16xf32>
    %249 = vector.shape_cast %248 : vector<1x8x16xf32> to vector<8x16xf32>
    %250 = vector.broadcast %247 : vector<1x16xf32> to vector<8x16xf32>
    %251 = arith.mulf %249, %250 : vector<8x16xf32>
    %252 = vector.extract_strided_slice %242 {offsets = [5, 0, 0], sizes = [1, 8, 16], strides = [1, 1, 1]} : vector<8x8x16xf32> to vector<1x8x16xf32>
    %253 = vector.shape_cast %252 : vector<1x8x16xf32> to vector<8x16xf32>
    %254 = vector.broadcast %247 : vector<1x16xf32> to vector<8x16xf32>
    %255 = arith.mulf %253, %254 : vector<8x16xf32>
    %c5_i32 = arith.constant 5 : i32
    %256 = vector.broadcast %c5_i32 : i32 to vector<8x1x1xi32>
    %257 = arith.cmpi eq, %37, %256 : vector<8x1x1xi32>
    %258 = vector.shape_cast %251 : vector<8x16xf32> to vector<1x8x16xf32>
    %259 = vector.shape_cast %244 : vector<8x16xf32> to vector<8x1x16xf32>
    %260 = vector.shape_cast %251 : vector<8x16xf32> to vector<1x8x16xf32>
    %261 = vector.broadcast %259 : vector<8x1x16xf32> to vector<8x8x16xf32>
    %262 = vector.broadcast %260 : vector<1x8x16xf32> to vector<8x8x16xf32>
    %263 = arith.mulf %261, %262 : vector<8x8x16xf32>
    %264 = arith.subf %228, %263 : vector<8x8x16xf32>
    %265 = vector.shape_cast %257 : vector<8x1x1xi1> to vector<8x1x1xi1>
    %266 = vector.broadcast %265 : vector<8x1x1xi1> to vector<8x8x16xi1>
    %267 = vector.shape_cast %258 : vector<1x8x16xf32> to vector<1x8x16xf32>
    %268 = vector.broadcast %267 : vector<1x8x16xf32> to vector<8x8x16xf32>
    %269 = arith.select %266, %268, %264 : vector<8x8x16xi1>, vector<8x8x16xf32>
    %c5_i32_27 = arith.constant 5 : i32
    %270 = vector.broadcast %c5_i32_27 : i32 to vector<8x1x1xi32>
    %271 = arith.cmpi eq, %37, %270 : vector<8x1x1xi32>
    %272 = vector.shape_cast %255 : vector<8x16xf32> to vector<1x8x16xf32>
    %273 = vector.shape_cast %244 : vector<8x16xf32> to vector<8x1x16xf32>
    %274 = vector.shape_cast %255 : vector<8x16xf32> to vector<1x8x16xf32>
    %275 = vector.broadcast %273 : vector<8x1x16xf32> to vector<8x8x16xf32>
    %276 = vector.broadcast %274 : vector<1x8x16xf32> to vector<8x8x16xf32>
    %277 = arith.mulf %275, %276 : vector<8x8x16xf32>
    %278 = arith.subf %242, %277 : vector<8x8x16xf32>
    %279 = vector.shape_cast %271 : vector<8x1x1xi1> to vector<8x1x1xi1>
    %280 = vector.broadcast %279 : vector<8x1x1xi1> to vector<8x8x16xi1>
    %281 = vector.shape_cast %272 : vector<1x8x16xf32> to vector<1x8x16xf32>
    %282 = vector.broadcast %281 : vector<1x8x16xf32> to vector<8x8x16xf32>
    %283 = arith.select %280, %282, %278 : vector<8x8x16xi1>, vector<8x8x16xf32>
    %284 = vector.extract_strided_slice %269 {offsets = [0, 6, 0], sizes = [8, 1, 16], strides = [1, 1, 1]} : vector<8x8x16xf32> to vector<8x1x16xf32>
    %285 = vector.shape_cast %284 : vector<8x1x16xf32> to vector<8x16xf32>
    %286 = vector.extract_strided_slice %285 {offsets = [6, 0], sizes = [1, 16], strides = [1, 1]} : vector<8x16xf32> to vector<1x16xf32>
    %cst_28 = arith.constant 1.000000e+00 : f32
    %287 = vector.broadcast %cst_28 : f32 to vector<1x16xf32>
    %288 = arith.divf %287, %286 : vector<1x16xf32>
    %289 = vector.extract_strided_slice %269 {offsets = [6, 0, 0], sizes = [1, 8, 16], strides = [1, 1, 1]} : vector<8x8x16xf32> to vector<1x8x16xf32>
    %290 = vector.shape_cast %289 : vector<1x8x16xf32> to vector<8x16xf32>
    %291 = vector.broadcast %288 : vector<1x16xf32> to vector<8x16xf32>
    %292 = arith.mulf %290, %291 : vector<8x16xf32>
    %293 = vector.extract_strided_slice %283 {offsets = [6, 0, 0], sizes = [1, 8, 16], strides = [1, 1, 1]} : vector<8x8x16xf32> to vector<1x8x16xf32>
    %294 = vector.shape_cast %293 : vector<1x8x16xf32> to vector<8x16xf32>
    %295 = vector.broadcast %288 : vector<1x16xf32> to vector<8x16xf32>
    %296 = arith.mulf %294, %295 : vector<8x16xf32>
    %c6_i32 = arith.constant 6 : i32
    %297 = vector.broadcast %c6_i32 : i32 to vector<8x1x1xi32>
    %298 = arith.cmpi eq, %37, %297 : vector<8x1x1xi32>
    %299 = vector.shape_cast %292 : vector<8x16xf32> to vector<1x8x16xf32>
    %300 = vector.shape_cast %285 : vector<8x16xf32> to vector<8x1x16xf32>
    %301 = vector.shape_cast %292 : vector<8x16xf32> to vector<1x8x16xf32>
    %302 = vector.broadcast %300 : vector<8x1x16xf32> to vector<8x8x16xf32>
    %303 = vector.broadcast %301 : vector<1x8x16xf32> to vector<8x8x16xf32>
    %304 = arith.mulf %302, %303 : vector<8x8x16xf32>
    %305 = arith.subf %269, %304 : vector<8x8x16xf32>
    %306 = vector.shape_cast %298 : vector<8x1x1xi1> to vector<8x1x1xi1>
    %307 = vector.broadcast %306 : vector<8x1x1xi1> to vector<8x8x16xi1>
    %308 = vector.shape_cast %299 : vector<1x8x16xf32> to vector<1x8x16xf32>
    %309 = vector.broadcast %308 : vector<1x8x16xf32> to vector<8x8x16xf32>
    %310 = arith.select %307, %309, %305 : vector<8x8x16xi1>, vector<8x8x16xf32>
    %c6_i32_29 = arith.constant 6 : i32
    %311 = vector.broadcast %c6_i32_29 : i32 to vector<8x1x1xi32>
    %312 = arith.cmpi eq, %37, %311 : vector<8x1x1xi32>
    %313 = vector.shape_cast %296 : vector<8x16xf32> to vector<1x8x16xf32>
    %314 = vector.shape_cast %285 : vector<8x16xf32> to vector<8x1x16xf32>
    %315 = vector.shape_cast %296 : vector<8x16xf32> to vector<1x8x16xf32>
    %316 = vector.broadcast %314 : vector<8x1x16xf32> to vector<8x8x16xf32>
    %317 = vector.broadcast %315 : vector<1x8x16xf32> to vector<8x8x16xf32>
    %318 = arith.mulf %316, %317 : vector<8x8x16xf32>
    %319 = arith.subf %283, %318 : vector<8x8x16xf32>
    %320 = vector.shape_cast %312 : vector<8x1x1xi1> to vector<8x1x1xi1>
    %321 = vector.broadcast %320 : vector<8x1x1xi1> to vector<8x8x16xi1>
    %322 = vector.shape_cast %313 : vector<1x8x16xf32> to vector<1x8x16xf32>
    %323 = vector.broadcast %322 : vector<1x8x16xf32> to vector<8x8x16xf32>
    %324 = arith.select %321, %323, %319 : vector<8x8x16xi1>, vector<8x8x16xf32>
    %325 = vector.extract_strided_slice %310 {offsets = [0, 7, 0], sizes = [8, 1, 16], strides = [1, 1, 1]} : vector<8x8x16xf32> to vector<8x1x16xf32>
    %326 = vector.shape_cast %325 : vector<8x1x16xf32> to vector<8x16xf32>
    %327 = vector.extract_strided_slice %326 {offsets = [7, 0], sizes = [1, 16], strides = [1, 1]} : vector<8x16xf32> to vector<1x16xf32>
    %cst_30 = arith.constant 1.000000e+00 : f32
    %328 = vector.broadcast %cst_30 : f32 to vector<1x16xf32>
    %329 = arith.divf %328, %327 : vector<1x16xf32>
    %330 = vector.extract_strided_slice %324 {offsets = [7, 0, 0], sizes = [1, 8, 16], strides = [1, 1, 1]} : vector<8x8x16xf32> to vector<1x8x16xf32>
    %331 = vector.shape_cast %330 : vector<1x8x16xf32> to vector<8x16xf32>
    %332 = vector.broadcast %329 : vector<1x16xf32> to vector<8x16xf32>
    %333 = arith.mulf %331, %332 : vector<8x16xf32>
    %c7_i32 = arith.constant 7 : i32
    %334 = vector.broadcast %c7_i32 : i32 to vector<8x1x1xi32>
    %335 = arith.cmpi eq, %37, %334 : vector<8x1x1xi32>
    %336 = vector.shape_cast %333 : vector<8x16xf32> to vector<1x8x16xf32>
    %337 = vector.shape_cast %326 : vector<8x16xf32> to vector<8x1x16xf32>
    %338 = vector.shape_cast %333 : vector<8x16xf32> to vector<1x8x16xf32>
    %339 = vector.broadcast %337 : vector<8x1x16xf32> to vector<8x8x16xf32>
    %340 = vector.broadcast %338 : vector<1x8x16xf32> to vector<8x8x16xf32>
    %341 = arith.mulf %339, %340 : vector<8x8x16xf32>
    %342 = arith.subf %324, %341 : vector<8x8x16xf32>
    %343 = vector.shape_cast %335 : vector<8x1x1xi1> to vector<8x1x1xi1>
    %344 = vector.broadcast %343 : vector<8x1x1xi1> to vector<8x8x16xi1>
    %345 = vector.shape_cast %336 : vector<1x8x16xf32> to vector<1x8x16xf32>
    %346 = vector.broadcast %345 : vector<1x8x16xf32> to vector<8x8x16xf32>
    %347 = arith.select %344, %346, %342 : vector<8x8x16xi1>, vector<8x8x16xf32>
    %348 = vector.shape_cast %347 : vector<8x8x16xf32> to vector<64x16xf32>
    %c0_31 = arith.constant 0 : index
    %c0_32 = arith.constant 0 : index
    %349 = vector.load %arg8[%c0_31, %c0_32] : memref<64x256xf32, #tpu.memory_space<vmem>>, vector<64x256xf32>
    %cst_33 = arith.constant dense<0.000000e+00> : vector<16x256xf32>
    %350 = tpu.matmul %348, %349, %cst_33 {dimension_numbers = #tpu.dot_dimension_numbers<[0], [0], [1], [1], [0, 1, 1, 1], [], []>} : vector<64x16xf32>, vector<64x256xf32>, vector<16x256xf32> -> vector<16x256xf32>
    %c0_34 = arith.constant 0 : index
    %c0_35 = arith.constant 0 : index
    %351 = vector.load %arg9[%c0_34, %c0_35] : memref<16x256xf32, #tpu.memory_space<vmem>>, vector<16x256xf32>
    %cst_36 = arith.constant dense<0.000000e+00> : vector<16x256xf32>
    %352 = tpu.matmul %21, %351, %cst_36 {dimension_numbers = #tpu.dot_dimension_numbers<[1], [0], [0], [1], [0, 0, 1, 1], [], []>} : vector<16x16xf32>, vector<16x256xf32>, vector<16x256xf32> -> vector<16x256xf32>
    %c0_37 = arith.constant 0 : index
    %c0_38 = arith.constant 0 : index
    %353 = vector.load %arg10[%c0_37, %c0_38] : memref<16x256xf32, #tpu.memory_space<vmem>>, vector<16x256xf32>
    %cst_39 = arith.constant dense<0.000000e+00> : vector<16x256xf32>
    %354 = tpu.matmul %21, %353, %cst_39 {dimension_numbers = #tpu.dot_dimension_numbers<[1], [0], [0], [1], [0, 0, 1, 1], [], []>} : vector<16x16xf32>, vector<16x256xf32>, vector<16x256xf32> -> vector<16x256xf32>
    %355 = arith.mulf %352, %350 : vector<16x256xf32>
    %356 = arith.mulf %355, %354 : vector<16x256xf32>
    %c0_40 = arith.constant 0 : index
    %c0_41 = arith.constant 0 : index
    %357 = vector.load %arg2[%c0_40, %c0_41] : memref<16x256xf32, #tpu.memory_space<vmem>>, vector<16x256xf32>
    %358 = arith.subf %356, %357 : vector<16x256xf32>
    %359 = arith.mulf %358, %358 : vector<16x256xf32>
    %360 = vector.shape_cast %359 : vector<16x256xf32> to vector<1x16x256xf32>
    %cst_42 = arith.constant dense<0.000000e+00> : vector<1xf32>
    %361 = vector.multi_reduction <add>, %360, %cst_42 [1, 2] : vector<1x16x256xf32> to vector<1xf32>
    %362 = vector.shape_cast %361 : vector<1xf32> to vector<1x1x1xf32>
    %363 = vector.extract %362[0, 0, 0] : f32 from vector<1x1x1xf32>
    %cst_43 = arith.constant 3.906250e-03 : f32
    %364 = arith.mulf %18, %cst_43 : f32
    %cst_44 = arith.constant 1.000000e+00 : f32
    %365 = arith.mulf %cst_44, %363 : f32
    %cst_45 = arith.constant 6.250000e-02 : f32
    %366 = arith.mulf %365, %cst_45 : f32
    %367 = arith.addf %364, %366 : f32
    %368 = vector.broadcast %367 : f32 to vector<1x8x128xf32>
    %c0_46 = arith.constant 0 : index
    %c0_47 = arith.constant 0 : index
    %c0_48 = arith.constant 0 : index
    %369 = vector.load %arg11[%c0_46, %c0_47, %c0_48] : memref<1x8x128xf32, #tpu.memory_space<vmem>>, vector<1x8x128xf32>
    tpu.vector_store %arg11[%c0_46, %c0_47, %c0_48], %368 {strides = array<i32>} : memref<1x8x128xf32, #tpu.memory_space<vmem>>, vector<1x8x128xf32>,
    return
  }
  func.func @transform_0(%arg0: i32) -> (i32, i32) {
    %c0_i32 = arith.constant 0 : i32
    %c0_i32_0 = arith.constant 0 : i32
    return %arg0, %c0_i32 : i32, i32
  }
  func.func @transform_1(%arg0: i32) -> (i32, i32) {
    %c0_i32 = arith.constant 0 : i32
    %c0_i32_0 = arith.constant 0 : i32
    return %arg0, %c0_i32 : i32, i32
  }
  func.func @transform_2(%arg0: i32) -> (i32, i32) {
    %c0_i32 = arith.constant 0 : i32
    %c0_i32_0 = arith.constant 0 : i32
    %c0_i32_1 = arith.constant 0 : i32
    return %c0_i32, %c0_i32_0 : i32, i32
  }
  func.func @transform_3(%arg0: i32) -> (i32, i32) {
    %c0_i32 = arith.constant 0 : i32
    %c0_i32_0 = arith.constant 0 : i32
    %c0_i32_1 = arith.constant 0 : i32
    return %c0_i32, %c0_i32_0 : i32, i32
  }
  func.func @transform_4(%arg0: i32) -> (i32, i32) {
    %c0_i32 = arith.constant 0 : i32
    %c0_i32_0 = arith.constant 0 : i32
    %c0_i32_1 = arith.constant 0 : i32
    return %c0_i32, %c0_i32_0 : i32, i32
  }
  func.func @transform_5(%arg0: i32) -> (i32, i32) {
    %c0_i32 = arith.constant 0 : i32
    %c0_i32_0 = arith.constant 0 : i32
    %c0_i32_1 = arith.constant 0 : i32
    return %c0_i32, %c0_i32_0 : i32, i32
  }
  func.func @transform_6(%arg0: i32) -> (i32, i32) {
    %c0_i32 = arith.constant 0 : i32
    %c0_i32_0 = arith.constant 0 : i32
    %c0_i32_1 = arith.constant 0 : i32
    return %c0_i32, %c0_i32_0 : i32, i32
  }
  func.func @transform_7(%arg0: i32) -> (i32, i32) {
    %c0_i32 = arith.constant 0 : i32
    %c0_i32_0 = arith.constant 0 : i32
    %c0_i32_1 = arith.constant 0 : i32
    return %c0_i32, %c0_i32_0 : i32, i32
  }
  func.func @transform_8(%arg0: i32) -> (i32, i32) {
    %c0_i32 = arith.constant 0 : i32
    %c0_i32_0 = arith.constant 0 : i32
    %c0_i32_1 = arith.constant 0 : i32
    return %c0_i32, %c0_i32_0 : i32, i32
  }
  func.func @transform_9(%arg0: i32) -> (i32, i32) {
    %c0_i32 = arith.constant 0 : i32
    %c0_i32_0 = arith.constant 0 : i32
    %c0_i32_1 = arith.constant 0 : i32
    return %c0_i32, %c0_i32_0 : i32, i32
  }
  func.func @transform_10(%arg0: i32) -> (i32, i32, i32) {
    %c0_i32 = arith.constant 0 : i32
    %c0_i32_0 = arith.constant 0 : i32
    %c0_i32_1 = arith.constant 0 : i32
    return %arg0, %c0_i32, %c0_i32_0 : i32, i32, i32
  }
}

</mosaic_0001>

<bundles_post_ra>
// kernel: tbae_loss_pallas.1
= control target key start
LH: loop header
LB: loop body
LE: loop exit
PB: predicated region body
PF: predicated region fallthrough
CT: control target
= control target key end

     0   :  { %vm46_vm0 = vcmask 130048   ;;  %vm138_vm1 = vcmask 64512   ;;  %v1553_v13 = vmov 0.0   ;;  %v387_v52 = vlaneseq  ;;  %s2061_s2 = inlined_call_operand.vmem [shape: f32[16,8], index: 2, kind: input, shape index: {}]   ;;  %s2062_s0 = inlined_call_operand.vmem [shape: f32[16,16], index: 0, kind: input, shape index: {}]   ;;  %s2063_s4 = inlined_call_operand.vmem [shape: f32[8,16], index: 4, kind: input, shape index: {}]   ;;  %s2064_s3 = inlined_call_operand.vmem [shape: f32[1,8], index: 3, kind: input, shape index: {}]   ;;  %s2065_s6 = inlined_call_operand.vmem [shape: f32[64,16], index: 6, kind: input, shape index: {}]   ;;  %s2066_s5 = inlined_call_operand.vmem [shape: f32[1,16], index: 5, kind: input, shape index: {}]   ;;  %s2067_s8 = inlined_call_operand.vmem [shape: f32[16,256], index: 8, kind: input, shape index: {}]   ;;  %s2068_s7 = inlined_call_operand.vmem [shape: f32[64,256], index: 7, kind: input, shape index: {}]   ;;  %s2069_s9 = inlined_call_operand.vmem [shape: f32[16,256], index: 9, kind: input, shape index: {}]   ;;  %s2070_s1 = inlined_call_operand.vmem [shape: f32[16,256], index: 1, kind: input, shape index: {}]   ;;  %s2071_s10 = inlined_call_operand.vmem [shape: f32[1,8,128], index: 10, kind: output, shape index: {}]  }
   0x1   :  { %v38_v0 = vld [vmem:[%s2061_s2 + $0x8] sm:$0xff]  ;;  %v37_v1 = vld [vmem:[%s2061_s2] sm:$0xff]  ;;  %v1243_v34 = vld [vmem:[%s2067_s8 + $0x18] sm:$0xff]  ;;  %vm1156_vm10 = vcmask 523264  }
   0x2   :  { %v35_v2 = vld [vmem:[%s2062_s0] sm:$0xff]  ;;  %1496 = vmatprep.subr.mxu0 %v38_v0  ;;  %v36_v3 = vld [vmem:[%s2062_s0 + $0x8] sm:$0xff]  ;;  %v246_v36 = vld [vmem:[%s2065_s6 + $0x10] sm:$0xff]  ;;  %v1697_v53 = vshrl.u32 %v387_v52, 7 }
   0x3   :  { %1500 = vmatprep.mubr.msk.f32.mxu0 %vm46_vm0, %v35_v2  ;;  %1497 = vmatpush3.msra.mxu0 %v38_v0  ;;  %v130_v4 = vld [vmem:[%s2063_s4] sm:$0xff]  ;;  %v245_v35 = vld [vmem:[%s2065_s6 + $0x8] sm:$0xff]  ;;  %v1242_v37 = vld [vmem:[%s2067_s8 + $0x10] sm:$0xff] }
   0x4   :  { %1498 = vmatprep.subr.mxu0 %v37_v1  ;;  %1503 = vmatprep.subr.mxu1 %v130_v4  ;;  %v1449_v5 = vld [vmem:[%s2064_s3] ss:$0 sm:$0xff]  ;;  %v1241_v38 = vld [vmem:[%s2067_s8 + $0x8] sm:$0xff]  ;;  %v247_v40 = vld [vmem:[%s2065_s6 + $0x18] sm:$0xff]  ;;  %vm389_vm2 = vcmp.eq.s32.totalorder %v1697_v53, 0  ;;  %vm392_vm3 = vcmp.eq.s32.totalorder %v1697_v53, 3 }
   0x5   :  { %1499 = vmatpush3.msra.mxu0 %v37_v1  ;;  %1504 = vmatpush3.msra.mxu1 %v130_v4  ;;  %v244_v12 = vld [vmem:[%s2065_s6] sm:$0xff]  ;;  %v249_v42 = vld [vmem:[%s2065_s6 + $0x28] sm:$0xff]  ;;  %v250_v43 = vld [vmem:[%s2065_s6 + $0x30] sm:$0xff]  ;;  %v1465_v54 = vsel %vm389_vm2, 1.0, %v1553_v13  ;;  %vm391_vm4 = vcmp.eq.s32.totalorder %v1697_v53, 2  ;;  %vm394_vm5 = vcmp.eq.s32.totalorder %v1697_v53, 5 }
   0x6   :  { %1501 = vmatmul.mubr.msk.f32.vlgmr.msra.gmra.mxu0 %vm46_vm0, %v36_v3  ;;  %v1452_v14 = vld [vmem:[%s2066_s5] ss:$0 sm:$0xff]  ;;  %v251_v44 = vld [vmem:[%s2065_s6 + $0x38] sm:$0xff]  ;;  %v413_v55 = vmul.f32 1e-06, %v1465_v54  ;;  %vm390_vm6 = vcmp.eq.s32.totalorder %v1697_v53, 1 }
   0x7   :  { %1227 = vmatprep.mubr.f32.mxu0 %v1553_v13  ;;  %v1240_v39 = vld [vmem:[%s2067_s8] sm:$0xff]  ;;  %v1706_v61 = vsel %vm392_vm3, 1.0, %v1553_v13  ;;  %v1709_v63 = vsel %vm391_vm4, 1.0, %v1553_v13  ;;  %v1712_v0 = vsel %vm394_vm5, 1.0, %v1553_v13  ;;  %vm393_vm7 = vcmp.eq.s32.totalorder %v1697_v53, 4 }
   0x8   :  { %v248_v41 = vld [vmem:[%s2065_s6 + $0x20] sm:$0xff]  ;;  %v1716_v1 = vsel %vm390_vm6, 1.0, %v1553_v13  ;;  %vm396_vm8 = vcmp.eq.s32.totalorder %v1697_v53, 7  ;;  %vm395_vm9 = vcmp.eq.s32.totalorder %v1697_v53, 6  ;;  %v418_v4 = vmul.f32 1e-06, %v1712_v0 }
  0xc6   :  { %v1502_v6 = vpop.f32.mrf.mxu0 }
  0xc7   :  { %v125_v7 = vadd.f32 %v1502_v6, %v1449_v5  ;;  %v1724_v6 = vsel %vm393_vm7, 1.0, %v1553_v13 }
  0xc8   :  { %v119_v8 = vpop.f32.mrf.mxu0 }
  0xc9   :  { %v120_v9 = vadd.f32 %v1449_v5, %v119_v8  ;;  %v1728_v8 = vsel %vm396_vm8, 1.0, %v1553_v13 }
  0xcb   :  { %1529 = vtanh.f32 %v120_v9  ;;  %v1731_v9 = vsel %vm395_vm9, 1.0, %v1553_v13 }
  0xcc   :  { %1531 = vtanh.f32 %v125_v7  ;;  %v414_v7 = vmul.f32 1e-06, %v1716_v1 }
  0xd8   :  { %v1530_v10 = vpop.eup %1529 }
  0xd9   :  { %v1532_v11 = vpop.eup %1531  ;;  %1505 = vmatprep.mubr.msk.f32.mxu1 %vm138_vm1, %v1530_v10 }
  0xda   :  { %1506 = vmatmul.mubr.msk.f32.vlgmr.msra.gmra.mxu1 %vm138_vm1, %v1532_v11  ;;  %v417_v11 = vmul.f32 1e-06, %v1724_v6 }
  0xdb   :  { %1512 = vmatprep.mubr.msk.f32.mxu1 %vm46_vm0, %v244_v12 }
 0x19a   :  { %v1507_v15 = vpop.f32.mrf.mxu1 }
 0x19b   :  { %v217_v16 = vadd.f32 %v1507_v15, %v1452_v14 }
 0x19c   :  { %v211_v17 = vpop.f32.mrf.mxu1 }
 0x19d   :  { %1533 = vtanh.f32 %v217_v16  ;;  %v212_v18 = vadd.f32 %v1452_v14, %v211_v17  ;;  %v420_v16 = vmul.f32 1e-06, %v1728_v8 }
 0x19f   :  { %1535 = vtanh.f32 %v212_v18  ;;  %v433_v18 = vsub.s32 0, %v1697_v53 }
 0x1aa   :  { %v1534_v19 = vpop.eup %1533 }
 0x1ab   :  { %v239_v20 = vmul.f32 %v1534_v19, %v1534_v19  ;;  %v223_v21 = vsub.f32 %v1534_v19, %v36_v3  ;;  %v415_v3 = vmul.f32 1e-06, %v1709_v63  ;;  %v419_v19 = vmul.f32 1e-06, %v1731_v9 }
 0x1ac   :  { %v1536_v22 = vpop.eup %1535 }
 0x1ad   :  { %v1637_v23 = vsub.f32 1.0, %v239_v20  ;;  %v238_v24 = vmul.f32 %v1536_v22, %v1536_v22  ;;  %v222_v25 = vsub.f32 %v1536_v22, %v35_v2  ;;  %v225_v26 = vmul.f32 %v223_v21, %v223_v21 }
 0x1ae   :  { %v416_v2 = vmul.f32 1e-06, %v1706_v61 }
 0x1af   :  { %v243_v27 = vmul.f32 %v1637_v23, %v1637_v23  ;;  %v1641_v28 = vsub.f32 1.0, %v238_v24  ;;  %v224_v29 = vmul.f32 %v222_v25, %v222_v25  ;;  %v227_v32 = vsel %vm46_vm0, %v225_v26, 0.0 }
 0x1b1   :  { %1508 = vmatprep.subr.msk.mxu1 %vm46_vm0, %v243_v27  ;;  %v242_v30 = vmul.f32 %v1641_v28, %v1641_v28  ;;  %v226_v31 = vsel %vm46_vm0, %v224_v29, 0.0 }
 0x1b2   :  { %1509 = vmatpush3.xpose.msk.msra.mxu1 %vm46_vm0, %v243_v27  ;;  %v228_v33 = vadd.f32 %v227_v32, %v226_v31 }
 0x1b3   :  { %1510 = vmatprep.subr.msk.mxu1 %vm46_vm0, %v242_v30 }
 0x1b4   :  { %229 = vadd.xlane.f32.xlu1 %v228_v33 }
 0x1b6   :  { %1511 = vmatpush3.xpose.msk.msra.mxu1 %vm46_vm0, %v242_v30 }
 0x1b7   :  { %1278 = vmatprep.subr.mxu1 %v1243_v34 }
 0x1b9   :  { %1513 = vmatmul.mubr.msk.f32.vlgmr.msra.gmra.mxu1 %vm46_vm0, %v245_v35 }
 0x1ba   :  { %1515 = vmatprep.mubr.msk.f32.mxu1 %vm46_vm0, %v246_v36  ;;  %1279 = vmatpush1.msra.mxu1 %v1242_v37 }
 0x1bb   :  { %1280 = vmatprep.subr.mxu1 %v1241_v38 }
 0x1bc   :  { %1281 = vmatpush1.msra.mxu1 %v1240_v39 }
 0x1bd   :  { %1516 = vmatmul.mubr.msk.f32.gmra.mxu1 %vm46_vm0, %v247_v40 }
 0x1be   :  { %1518 = vmatprep.mubr.msk.f32.mxu1 %vm46_vm0, %v248_v41 }
 0x1c1   :  { %1519 = vmatmul.mubr.msk.f32.gmra.mxu1 %vm46_vm0, %v249_v42 }
 0x1c2   :  { %1521 = vmatprep.mubr.msk.f32.mxu1 %vm46_vm0, %v250_v43 }
 0x1c5   :  { %1522 = vmatmul.mubr.msk.f32.gmra.mxu1 %vm46_vm0, %v251_v44  ;;  %v521_v44 = vsub.s32 1, %v1697_v53 }
 0x1c6   :  { %1314 = vmatprep.mubr.f32.mxu1 %v1553_v13 }
 0x1c9   :  { %1475 = vmatmul.mubr.msk.f32.vlgmr.msra.gmra.mxu1 %vm46_vm0, %v1641_v28 }
 0x1ca   :  { %1320 = vmatprep.mubr.f32.mxu1 %v1553_v13 }
 0x1cd   :  { %1476 = vmatmul.mubr.msk.f32.gmra.mxu1 %vm46_vm0, %v1637_v23 }
 0x23d   :  { %v230_v45 = vpop.xlane.xlu1 %229 }
 0x23e   :  { %v231_v46 = vrot.slane %v230_v45, 4 }
 0x240   :  { %v232_v47 = vadd.f32 %v231_v46, %v230_v45 }
 0x242   :  { %v233_v48 = vrot.slane %v232_v47, 2 }
 0x244   :  { %v234_v49 = vadd.f32 %v233_v48, %v232_v47 }
 0x246   :  { %v235_v50 = vrot.slane %v234_v49, 1 }
 0x248   :  { %v236_v51 = vadd.f32 %v235_v50, %v234_v49 }
 0x24a   :  { %1524 = vpush %v236_v51 }
 0x279   :  { %v1514_v56 = vpop.f32.mrf.mxu1 }
 0x27a   :  { %v422_v17 = vadd.f32 %v1514_v56, %v414_v7 }
 0x27b   :  { %v348_v57 = vpop.f32.mrf.mxu1 }
 0x27c   :  { %v421_v58 = vadd.f32 %v413_v55, %v348_v57  ;;  %v444_v30 = vrot.slane %v422_v17, %v433_v18 }
 0x27d   :  { %v1517_v59 = vpop.f32.mrf.mxu1 }
 0x27e   :  { %1537 = vrcp.f32 %v421_v58  ;;  %v424_v10 = vadd.f32 %v1517_v59, %v416_v2 }
 0x27f   :  { %v358_v60 = vpop.f32.mrf.mxu1 }
 0x280   :  { %v423_v12 = vadd.f32 %v415_v3, %v358_v60  ;;  %v452_v22 = vrot.slane %v424_v10, %v433_v18 }
 0x281   :  { %v1520_v62 = vpop.f32.mrf.mxu1 }
 0x282   :  { %v426_v14 = vadd.f32 %v1520_v62, %v418_v4  ;;  %v448_v25 = vrot.slane %v423_v12, %v433_v18 }
 0x283   :  { %v368_v5 = vpop.f32.mrf.mxu1 }
 0x284   :  { %v425_v24 = vadd.f32 %v417_v11, %v368_v5  ;;  %v460_v26 = vrot.slane %v426_v14, %v433_v18 }
 0x285   :  { %v1523_v15 = vpop.f32.mrf.mxu1 }
 0x286   :  { %v428_v27 = vadd.f32 %v1523_v15, %v420_v16  ;;  %v456_v37 = vrot.slane %v425_v24, %v433_v18 }
 0x287   :  { %v378_v29 = vpop.f32.mrf.mxu1 }
 0x288   :  { %v427_v33 = vadd.f32 %v419_v19, %v378_v29  ;;  %v468_v41 = vrot.slane %v428_v27, %v433_v18 }
 0x28a   :  { %v464_v43 = vrot.slane %v427_v33, %v433_v18 }
 0x28b   :  { %v1538_v20 = vpop.eup %1537 }
 0x28c   :  { %v434_v21 = vrot.slane %v1538_v20, %v433_v18 }
 0x28e   :  { %v1737_v31 = vmul.f32 %v434_v21, %v421_v58  ;;  %v1739_v32 = vmul.f32 %v1465_v54, %v434_v21 }
 0x290   :  { %v470_v34 = vmul.f32 %v444_v30, %v1737_v31  ;;  %v494_v35 = vmul.f32 %v444_v30, %v1739_v32  ;;  %v496_v36 = vmul.f32 %v452_v22, %v1739_v32  ;;  %v495_v38 = vmul.f32 %v448_v25, %v1739_v32 }
 0x291   :  { %v474_v39 = vmul.f32 %v460_v26, %v1737_v31  ;;  %v498_v40 = vmul.f32 %v460_v26, %v1739_v32  ;;  %v497_v45 = vmul.f32 %v456_v37, %v1739_v32  ;;  %v476_v46 = vmul.f32 %v468_v41, %v1737_v31 }
 0x292   :  { %v478_v42 = vsub.f32 %v422_v17, %v470_v34  ;;  %v500_v47 = vmul.f32 %v468_v41, %v1739_v32  ;;  %v475_v48 = vmul.f32 %v464_v43, %v1737_v31  ;;  %v499_v49 = vmul.f32 %v464_v43, %v1739_v32 }
 0x293   :  { %v484_v50 = vsub.f32 %v428_v27, %v476_v46  ;;  %v528_v51 = vrot.slane %v1737_v31, %v521_v44  ;;  %v472_v56 = vmul.f32 %v452_v22, %v1737_v31  ;;  %v471_v57 = vmul.f32 %v448_v25, %v1737_v31 }
 0x294   :  { %1539 = vrcp.f32 %v478_v42  ;;  %v483_v52 = vsub.f32 %v427_v33, %v475_v48  ;;  %v473_v58 = vmul.f32 %v456_v37, %v1737_v31  ;;  %v482_v2 = vsub.f32 %v426_v14, %v474_v39 }
 0x295   :  { %v556_v54 = vrot.slane %v484_v50, %v521_v44  ;;  %v480_v59 = vsub.f32 %v424_v10, %v472_v56  ;;  %v479_v60 = vsub.f32 %v423_v12, %v471_v57  ;;  %v502_v4 = vsub.f32 %v1716_v1, %v494_v35 }
 0x296   :  { %v552_v55 = vrot.slane %v483_v52, %v521_v44  ;;  %v481_v3 = vsub.f32 %v425_v24, %v473_v58  ;;  %v504_v17 = vsub.f32 %v1706_v61, %v496_v36  ;;  %v548_v18 = vrot.slane %v482_v2, %v521_v44 }
 0x297   :  { %v540_v15 = vrot.slane %v480_v59, %v521_v44  ;;  %v536_v16 = vrot.slane %v479_v60, %v521_v44  ;;  %v503_v10 = vsub.f32 %v1709_v63, %v495_v38  ;;  %v506_v1 = vsub.f32 %v1712_v0, %v498_v40 }
 0x298   :  { %v544_v19 = vrot.slane %v481_v3, %v521_v44  ;;  %v505_v22 = vsub.f32 %v1724_v6, %v497_v45  ;;  %v609_v27 = vsub.s32 2, %v1697_v53  ;;  %v508_v30 = vsub.f32 %v1728_v8, %v500_v47 }
 0x299   :  { %v507_v6 = vsub.f32 %v1731_v9, %v499_v49 }
 0x2a1   :  { %v1540_v62 = vpop.eup %1539 }
 0x2a2   :  { %v522_v5 = vrot.slane %v1540_v62, %v521_v44 }
 0x2a4   :  { %v1758_v7 = vmul.f32 %v522_v5, %v478_v42  ;;  %v1760_v11 = vmul.f32 %v522_v5, %v502_v4 }
 0x2a6   :  { %v584_v20 = vmul.f32 %v540_v15, %v1760_v11  ;;  %v559_v12 = vmul.f32 %v536_v16, %v1758_v7  ;;  %v583_v14 = vmul.f32 %v536_v16, %v1760_v11  ;;  %v586_v21 = vmul.f32 %v548_v18, %v1760_v11 }
 0x2a7   :  { %v585_v24 = vmul.f32 %v544_v19, %v1760_v11  ;;  %v564_v0 = vmul.f32 %v556_v54, %v1758_v7  ;;  %v588_v33 = vmul.f32 %v556_v54, %v1760_v11  ;;  %v563_v34 = vmul.f32 %v552_v55, %v1758_v7 }
 0x2a8   :  { %v1771_v25 = vsub.f32 %v504_v17, %v584_v20  ;;  %v567_v61 = vsub.f32 %v479_v60, %v559_v12  ;;  %v591_v26 = vsub.f32 %v503_v10, %v583_v14  ;;  %v1774_v29 = vsub.f32 %v506_v1, %v586_v21 }
 0x2a9   :  { %v1776_v63 = vsub.f32 %v505_v22, %v585_v24  ;;  %v587_v35 = vmul.f32 %v552_v55, %v1760_v11  ;;  %v572_v36 = vsub.f32 %v484_v50, %v564_v0  ;;  %v1784_v37 = vsub.f32 %v508_v30, %v588_v33  ;;  %v1123_v33 = vld [vmem:[%s2068_s7 + $0x78] sm:$0xff] }
 0x2aa   :  { %1541 = vrcp.f32 %v567_v61  ;;  %v557_v38 = vmul.f32 %v528_v51, %v1758_v7  ;;  %v581_v39 = vmul.f32 %v528_v51, %v1760_v11  ;;  %v571_v40 = vsub.f32 %v483_v52, %v563_v34  ;;  %1179 = vmatprep.subr.mxu0 %v1123_v33 }
 0x2ab   :  { %v1788_v41 = vsub.f32 %v507_v6, %v587_v35  ;;  %v620_v8 = vrot.slane %v1758_v7, %v609_v27  ;;  %v644_v42 = vrot.slane %v572_v36, %v609_v27  ;;  %v560_v45 = vmul.f32 %v540_v15, %v1758_v7  ;;  %v1121_v6 = vld [vmem:[%s2068_s7 + $0x68] sm:$0xff] }
 0x2ac   :  { %v565_v43 = vsub.f32 %v1737_v31, %v557_v38  ;;  %v589_v9 = vsub.f32 %v1739_v32, %v581_v39  ;;  %v562_v46 = vmul.f32 %v548_v18, %v1758_v7  ;;  %v561_v47 = vmul.f32 %v544_v19, %v1758_v7  ;;  %v1119_v39 = vld [vmem:[%s2068_s7 + $0x58] sm:$0xff] }
 0x2ad   :  { %v568_v48 = vsub.f32 %v480_v59, %v560_v45  ;;  %v640_v15 = vrot.slane %v571_v40, %v609_v27  ;;  %v697_v16 = vsub.s32 3, %v1697_v53  ;;  %v1116_v45 = vld [vmem:[%s2068_s7 + $0x40] sm:$0xff] }
 0x2ae   :  { %v616_v44 = vrot.slane %v565_v43, %v609_v27  ;;  %v570_v49 = vsub.f32 %v482_v2, %v562_v46  ;;  %v569_v51 = vsub.f32 %v481_v3, %v561_v47 }
 0x2af   :  { %v628_v54 = vrot.slane %v568_v48, %v609_v27 }
 0x2b0   :  { %v636_v31 = vrot.slane %v570_v49, %v609_v27  ;;  %v632_v57 = vrot.slane %v569_v51, %v609_v27 }
 0x2b7   :  { %v1542_v50 = vpop.eup %1541 }
 0x2b8   :  { %v610_v52 = vrot.slane %v1542_v50, %v609_v27 }
 0x2ba   :  { %v1796_v55 = vmul.f32 %v610_v52, %v567_v61  ;;  %v1798_v56 = vmul.f32 %v610_v52, %v591_v26  ;;  %v1114_v52 = vld [vmem:[%s2068_s7 + $0x30] sm:$0xff] }
 0x2bc   :  { %v648_v32 = vmul.f32 %v628_v54, %v1796_v55  ;;  %v672_v58 = vmul.f32 %v628_v54, %v1798_v56  ;;  %v1803_v60 = vmul.f32 %v636_v31, %v1798_v56  ;;  %v1806_v59 = vmul.f32 %v632_v57, %v1798_v56 }
 0x2bd   :  { %v652_v62 = vmul.f32 %v644_v42, %v1796_v55  ;;  %v1810_v2 = vmul.f32 %v644_v42, %v1798_v56  ;;  %v675_v20 = vmul.f32 %v640_v15, %v1798_v56  ;;  %v645_v10 = vmul.f32 %v616_v44, %v1796_v55  ;;  %v1117_v42 = vld [vmem:[%s2068_s7 + $0x48] sm:$0xff] }
 0x2be   :  { %v680_v3 = vsub.f32 %v1771_v25, %v672_v58  ;;  %v656_v4 = vsub.f32 %v568_v48, %v648_v32  ;;  %v682_v5 = vsub.f32 %v1774_v29, %v1803_v60  ;;  %v681_v17 = vsub.f32 %v1776_v63, %v1806_v59  ;;  %v1115_v48 = vld [vmem:[%s2068_s7 + $0x38] sm:$0xff]  ;;  %v1112_v59 = vld [vmem:[%s2068_s7 + $0x20] sm:$0xff] }
 0x2bf   :  { %v1818_v18 = vsub.f32 %v572_v36, %v652_v62  ;;  %v684_v19 = vsub.f32 %v1784_v37, %v1810_v2  ;;  %v669_v12 = vmul.f32 %v616_v44, %v1798_v56  ;;  %v683_v14 = vsub.f32 %v1788_v41, %v675_v20  ;;  %v1120_v36 = vld [vmem:[%s2068_s7 + $0x60] sm:$0xff] }
 0x2c0   :  { %1543 = vrcp.f32 %v656_v4  ;;  %v646_v1 = vmul.f32 %v620_v8, %v1796_v55  ;;  %v1828_v21 = vmul.f32 %v620_v8, %v1798_v56  ;;  %v1830_v22 = vsub.f32 %v565_v43, %v645_v10  ;;  %v1118_v8 = vld [vmem:[%s2068_s7 + $0x50] sm:$0xff] }
 0x2c1   :  { %v1832_v24 = vsub.f32 %v589_v9, %v669_v12  ;;  %v1835_v25 = vrot.slane %v1796_v55, %v697_v16  ;;  %v650_v63 = vmul.f32 %v636_v31, %v1796_v55  ;;  %v649_v30 = vmul.f32 %v632_v57, %v1796_v55  ;;  %v1113_v57 = vld [vmem:[%s2068_s7 + $0x28] sm:$0xff] }
 0x2c2   :  { %v1838_v61 = vsub.f32 %v1758_v7, %v646_v1  ;;  %v678_v26 = vsub.f32 %v1760_v11, %v1828_v21  ;;  %v704_v27 = vrot.slane %v1830_v22, %v697_v16  ;;  %v651_v0 = vmul.f32 %v640_v15, %v1796_v55  ;;  %v1122_v7 = vld [vmem:[%s2068_s7 + $0x70] sm:$0xff]  ;;  %v1108_v1 = vld [vmem:[%s2068_s7] sm:$0xff] }
 0x2c3   :  { %v1856_v34 = vsub.f32 %v570_v49, %v650_v63  ;;  %v657_v35 = vsub.f32 %v569_v51, %v649_v30  ;;  %1180 = vmatpush1.msra.mxu0 %v1122_v7  ;;  %v732_v46 = vrot.slane %v1818_v18, %v697_v16  ;;  %v1110_v15 = vld [vmem:[%s2068_s7 + $0x10] sm:$0xff] }
 0x2c4   :  { %v708_v29 = vrot.slane %v1838_v61, %v697_v16  ;;  %v1861_v38 = vsub.f32 %v571_v40, %v651_v0  ;;  %1181 = vmatprep.subr.mxu0 %v1121_v6 }
 0x2c5   :  { %1182 = vmatpush1.msra.mxu0 %v1120_v36  ;;  %v724_v9 = vrot.slane %v1856_v34, %v697_v16  ;;  %v720_v44 = vrot.slane %v657_v35, %v697_v16 }
 0x2c6   :  { %1183 = vmatprep.subr.mxu0 %v1119_v39  ;;  %v728_v47 = vrot.slane %v1861_v38, %v697_v16 }
 0x2c7   :  { %1184 = vmatpush1.msra.mxu0 %v1118_v8 }
 0x2c8   :  { %1185 = vmatprep.subr.mxu0 %v1117_v42 }
 0x2c9   :  { %1186 = vmatpush1.msra.mxu0 %v1116_v45 }
 0x2ca   :  { %1187 = vmatprep.subr.mxu0 %v1115_v48 }
 0x2cb   :  { %1188 = vmatpush1.msra.mxu0 %v1114_v52 }
 0x2cc   :  { %1189 = vmatprep.subr.mxu0 %v1113_v57 }
 0x2cd   :  { %v1544_v37 = vpop.eup %1543  ;;  %1190 = vmatpush1.msra.mxu0 %v1112_v59 }
 0x2ce   :  { %v698_v41 = vrot.slane %v1544_v37, %v697_v16 }
 0x2d0   :  { %v1872_v43 = vmul.f32 %v698_v41, %v656_v4  ;;  %v1874_v40 = vmul.f32 %v698_v41, %v680_v3  ;;  %v1111_v3 = vld [vmem:[%s2068_s7 + $0x18] sm:$0xff] }
 0x2d1   :  { %1191 = vmatprep.subr.mxu0 %v1111_v3  ;;  %v873_v3 = vsub.s32 5, %v1697_v53 }
 0x2d2   :  { %v762_v49 = vmul.f32 %v724_v9, %v1874_v40  ;;  %v737_v50 = vmul.f32 %v720_v44, %v1872_v43  ;;  %v761_v51 = vmul.f32 %v720_v44, %v1874_v40  ;;  %v764_v54 = vmul.f32 %v732_v46, %v1874_v40  ;;  %1192 = vmatpush1.msra.mxu0 %v1110_v15 }
 0x2d3   :  { %v763_v31 = vmul.f32 %v728_v47, %v1874_v40  ;;  %v733_v4 = vmul.f32 %v704_v27, %v1872_v43  ;;  %v734_v16 = vmul.f32 %v708_v29, %v1872_v43  ;;  %v735_v12 = vmul.f32 %v1835_v25, %v1872_v43 }
 0x2d4   :  { %v1896_v32 = vsub.f32 %v682_v5, %v762_v49  ;;  %v745_v58 = vsub.f32 %v657_v35, %v737_v50  ;;  %v769_v60 = vsub.f32 %v681_v17, %v761_v51  ;;  %v1901_v62 = vsub.f32 %v684_v19, %v764_v54  ;;  %v1109_v19 = vld [vmem:[%s2068_s7 + $0x8] sm:$0xff] }
 0x2d5   :  { %v1903_v2 = vsub.f32 %v683_v14, %v763_v31  ;;  %v757_v5 = vmul.f32 %v704_v27, %v1874_v40  ;;  %v758_v17 = vmul.f32 %v708_v29, %v1874_v40  ;;  %v741_v20 = vsub.f32 %v1830_v22, %v733_v4  ;;  %v1330_v22 = vld [vmem:[%s2069_s9 + $0x18] sm:$0xff]  ;;  %1193 = vmatprep.subr.mxu0 %v1109_v19 }
 0x2d6   :  { %1545 = vrcp.f32 %v745_v58  ;;  %v759_v14 = vmul.f32 %v1835_v25, %v1874_v40  ;;  %v742_v27 = vsub.f32 %v1838_v61, %v734_v16  ;;  %1194 = vmatpush1.msra.mxu0 %v1108_v1  ;;  %v738_v63 = vmul.f32 %v724_v9, %v1872_v43 }
 0x2d7   :  { %v765_v10 = vsub.f32 %v1832_v24, %v757_v5  ;;  %v1931_v29 = vsub.f32 %v678_v26, %v758_v17  ;;  %v743_v24 = vsub.f32 %v1796_v55, %v735_v12  ;;  %1359 = vmatprep.subr.mxu0 %v1330_v22  ;;  %v740_v61 = vmul.f32 %v732_v46, %v1872_v43 }
 0x2d8   :  { %v767_v25 = vsub.f32 %v1798_v56, %v759_v14  ;;  %v739_v11 = vmul.f32 %v728_v47, %v1872_v43  ;;  %v746_v21 = vsub.f32 %v1856_v34, %v738_v63  ;;  %v785_v26 = vsub.s32 4, %v1697_v53 }
 0x2d9   :  { %v748_v30 = vsub.f32 %v1818_v18, %v740_v61 }
 0x2da   :  { %v747_v55 = vsub.f32 %v1861_v38, %v739_v11  ;;  %v812_v56 = vrot.slane %v746_v21, %v785_v26  ;;  %v792_v37 = vrot.slane %v741_v20, %v785_v26  ;;  %v796_v44 = vrot.slane %v742_v27, %v785_v26 }
 0x2db   :  { %v820_v35 = vrot.slane %v748_v30, %v785_v26  ;;  %v800_v47 = vrot.slane %v743_v24, %v785_v26  ;;  %v804_v49 = vrot.slane %v1872_v43, %v785_v26 }
 0x2dc   :  { %v816_v36 = vrot.slane %v747_v55, %v785_v26 }
 0x2e3   :  { %v1546_v0 = vpop.eup %1545 }
 0x2e4   :  { %v786_v33 = vrot.slane %v1546_v0, %v785_v26 }
 0x2e6   :  { %v1945_v7 = vmul.f32 %v786_v33, %v745_v58  ;;  %v1947_v6 = vmul.f32 %v786_v33, %v769_v60 }
 0x2e8   :  { %v826_v39 = vmul.f32 %v812_v56, %v1945_v7  ;;  %v850_v34 = vmul.f32 %v812_v56, %v1947_v6  ;;  %v852_v41 = vmul.f32 %v820_v35, %v1947_v6  ;;  %v851_v18 = vmul.f32 %v816_v36, %v1947_v6 }
 0x2e9   :  { %v845_v8 = vmul.f32 %v792_v37, %v1947_v6  ;;  %v846_v48 = vmul.f32 %v796_v44, %v1947_v6  ;;  %v847_v50 = vmul.f32 %v800_v47, %v1947_v6  ;;  %v848_v52 = vmul.f32 %v804_v49, %v1947_v6 }
 0x2ea   :  { %v858_v38 = vsub.f32 %v1896_v32, %v850_v34  ;;  %v834_v42 = vsub.f32 %v746_v21, %v826_v39  ;;  %v860_v9 = vsub.f32 %v1901_v62, %v852_v41  ;;  %v859_v45 = vsub.f32 %v1903_v2, %v851_v18 }
 0x2eb   :  { %v1957_v46 = vsub.f32 %v765_v10, %v845_v8  ;;  %v854_v51 = vsub.f32 %v1931_v29, %v846_v48  ;;  %v1964_v54 = vsub.f32 %v767_v25, %v847_v50  ;;  %v856_v31 = vsub.f32 %v1874_v40, %v848_v52 }
 0x2ec   :  { %1547 = vrcp.f32 %v834_v42  ;;  %v828_v57 = vmul.f32 %v820_v35, %v1945_v7  ;;  %v827_v32 = vmul.f32 %v816_v36, %v1945_v7  ;;  %v821_v58 = vmul.f32 %v792_v37, %v1945_v7 }
 0x2ed   :  { %v822_v60 = vmul.f32 %v796_v44, %v1945_v7  ;;  %v823_v59 = vmul.f32 %v800_v47, %v1945_v7  ;;  %v824_v62 = vmul.f32 %v804_v49, %v1945_v7  ;;  %v896_v41 = vrot.slane %v1945_v7, %v873_v3 }
 0x2ee   :  { %v836_v2 = vsub.f32 %v748_v30, %v828_v57  ;;  %v835_v4 = vsub.f32 %v747_v55, %v827_v32  ;;  %v829_v15 = vsub.f32 %v741_v20, %v821_v58  ;;  %v961_v49 = vsub.s32 6, %v1697_v53 }
 0x2ef   :  { %v830_v16 = vsub.f32 %v742_v27, %v822_v60  ;;  %v831_v40 = vsub.f32 %v743_v24, %v823_v59  ;;  %v832_v17 = vsub.f32 %v1872_v43, %v824_v62 }
 0x2f0   :  { %v908_v14 = vrot.slane %v836_v2, %v873_v3  ;;  %v904_v1 = vrot.slane %v835_v4, %v873_v3  ;;  %v880_v29 = vrot.slane %v829_v15, %v873_v3 }
 0x2f1   :  { %v884_v22 = vrot.slane %v830_v16, %v873_v3  ;;  %v888_v25 = vrot.slane %v831_v40, %v873_v3  ;;  %v892_v63 = vrot.slane %v832_v17, %v873_v3 }
 0x2f9   :  { %v1548_v5 = vpop.eup %1547 }
 0x2fa   :  { %v874_v19 = vrot.slane %v1548_v5, %v873_v3 }
 0x2fc   :  { %v1975_v10 = vmul.f32 %v874_v19, %v834_v42  ;;  %v1977_v12 = vmul.f32 %v874_v19, %v858_v38 }
 0x2fe   :  { %v916_v61 = vmul.f32 %v908_v14, %v1975_v10  ;;  %v940_v11 = vmul.f32 %v908_v14, %v1977_v12  ;;  %v915_v20 = vmul.f32 %v904_v1, %v1975_v10  ;;  %v939_v27 = vmul.f32 %v904_v1, %v1977_v12 }
 0x2ff   :  { %v909_v43 = vmul.f32 %v880_v29, %v1975_v10  ;;  %v933_v24 = vmul.f32 %v880_v29, %v1977_v12  ;;  %v910_v21 = vmul.f32 %v884_v22, %v1975_v10  ;;  %v934_v26 = vmul.f32 %v884_v22, %v1977_v12 }
 0x300   :  { %v924_v30 = vsub.f32 %v836_v2, %v916_v61  ;;  %v1987_v0 = vsub.f32 %v860_v9, %v940_v11  ;;  %v923_v55 = vsub.f32 %v835_v4, %v915_v20  ;;  %v947_v33 = vsub.f32 %v859_v45, %v939_v27 }
 0x301   :  { %v1989_v56 = vsub.f32 %v829_v15, %v909_v43  ;;  %v941_v35 = vsub.f32 %v1957_v46, %v933_v24  ;;  %v1992_v36 = vsub.f32 %v830_v16, %v910_v21  ;;  %v1994_v37 = vsub.f32 %v854_v51, %v934_v26 }
 0x302   :  { %1549 = vrcp.f32 %v923_v55  ;;  %v911_v39 = vmul.f32 %v888_v25, %v1975_v10  ;;  %v935_v34 = vmul.f32 %v888_v25, %v1977_v12  ;;  %v912_v18 = vmul.f32 %v892_v63, %v1975_v10 }
 0x303   :  { %v936_v8 = vmul.f32 %v892_v63, %v1977_v12  ;;  %v913_v9 = vmul.f32 %v896_v41, %v1975_v10  ;;  %v937_v44 = vmul.f32 %v896_v41, %v1977_v12  ;;  %v996_v52 = vrot.slane %v924_v30, %v961_v49 }
 0x304   :  { %v919_v38 = vsub.f32 %v831_v40, %v911_v39  ;;  %v943_v42 = vsub.f32 %v1964_v54, %v935_v34  ;;  %v920_v45 = vsub.f32 %v832_v17, %v912_v18  ;;  %v968_v54 = vrot.slane %v1989_v56, %v961_v49 }
 0x305   :  { %v2004_v46 = vsub.f32 %v856_v31, %v936_v8  ;;  %v921_v47 = vsub.f32 %v1945_v7, %v913_v9  ;;  %v945_v48 = vsub.f32 %v1947_v6, %v937_v44  ;;  %v972_v58 = vrot.slane %v1992_v36, %v961_v49 }
 0x306   :  { %v976_v60 = vrot.slane %v919_v38, %v961_v49  ;;  %v980_v59 = vrot.slane %v920_v45, %v961_v49  ;;  %v988_v61 = vrot.slane %v1975_v10, %v961_v49 }
 0x307   :  { %v984_v31 = vrot.slane %v921_v47, %v961_v49 }
 0x30f   :  { %v1550_v50 = vpop.eup %1549 }
 0x310   :  { %v962_v51 = vrot.slane %v1550_v50, %v961_v49 }
 0x312   :  { %v963_v57 = vmul.f32 %v962_v51, %v923_v55  ;;  %v2009_v32 = vmul.f32 %v962_v51, %v947_v33  ;;  %v1049_v33 = vsub.s32 7, %v1697_v53 }
 0x314   :  { %v1004_v62 = vmul.f32 %v996_v52, %v963_v57  ;;  %v997_v2 = vmul.f32 %v968_v54, %v963_v57  ;;  %v1021_v7 = vmul.f32 %v968_v54, %v2009_v32  ;;  %v1028_v6 = vmul.f32 %v996_v52, %v2009_v32 }
 0x315   :  { %v998_v3 = vmul.f32 %v972_v58, %v963_v57  ;;  %v1022_v4 = vmul.f32 %v972_v58, %v2009_v32  ;;  %v999_v5 = vmul.f32 %v976_v60, %v963_v57  ;;  %v1023_v15 = vmul.f32 %v976_v60, %v2009_v32  ;;  %v1328_v58 = vld [vmem:[%s2069_s9 + $0x8] sm:$0xff] }
 0x316   :  { %v1012_v16 = vsub.f32 %v924_v30, %v1004_v62  ;;  %v1005_v40 = vsub.f32 %v1989_v56, %v997_v2  ;;  %v1029_v17 = vsub.f32 %v941_v35, %v1021_v7  ;;  %v1036_v19 = vsub.f32 %v1987_v0, %v1028_v6 }
 0x317   :  { %v1006_v14 = vsub.f32 %v1992_v36, %v998_v3  ;;  %v1030_v1 = vsub.f32 %v1994_v37, %v1022_v4  ;;  %v1007_v29 = vsub.f32 %v919_v38, %v999_v5  ;;  %v1031_v22 = vsub.f32 %v943_v42, %v1023_v15  ;;  %v1416_v15 = vld [vmem:[%s2070_s1] sm:$0xff] }
 0x318   :  { %1551 = vrcp.f32 %v1012_v16  ;;  %v1000_v25 = vmul.f32 %v980_v59, %v963_v57  ;;  %v1024_v63 = vmul.f32 %v980_v59, %v2009_v32  ;;  %v1001_v11 = vmul.f32 %v984_v31, %v963_v57  ;;  %v1316_v59 = vpop.f32.mrf.mxu1 }
 0x319   :  { %v1025_v20 = vmul.f32 %v984_v31, %v2009_v32  ;;  %v1002_v24 = vmul.f32 %v988_v61, %v963_v57  ;;  %v1026_v21 = vmul.f32 %v988_v61, %v2009_v32  ;;  %v1055_v36 = vrot.slane %v1005_v40, %v1049_v33 }
 0x31a   :  { %v1008_v27 = vsub.f32 %v920_v45, %v1000_v25  ;;  %v1032_v43 = vsub.f32 %v2004_v46, %v1024_v63  ;;  %v1009_v26 = vsub.f32 %v921_v47, %v1001_v11  ;;  %v1059_v39 = vrot.slane %v1006_v14, %v1049_v33  ;;  %v1318_v2 = vpop.f32.mrf.mxu1  ;;  %v1419_v11 = vld [vmem:[%s2070_s1 + $0x18] sm:$0xff] }
 0x31b   :  { %v1033_v30 = vsub.f32 %v945_v48, %v1025_v20  ;;  %v1010_v0 = vsub.f32 %v1975_v10, %v1002_v24  ;;  %v1034_v55 = vsub.f32 %v1977_v12, %v1026_v21  ;;  %v1063_v34 = vrot.slane %v1007_v29, %v1049_v33  ;;  %v1418_v29 = vld [vmem:[%s2070_s1 + $0x10] sm:$0xff] }
 0x31c   :  { %v1067_v41 = vrot.slane %v1008_v27, %v1049_v33  ;;  %v1071_v18 = vrot.slane %v1009_v26, %v1049_v33  ;;  %v1079_v38 = vrot.slane %v963_v57, %v1049_v33  ;;  %v1329_v57 = vld [vmem:[%s2069_s9 + $0x10] sm:$0xff]  ;;  %v1322_v4 = vpop.f32.mrf.mxu1 }
 0x31d   :  { %v1075_v8 = vrot.slane %v1010_v0, %v1049_v33 }
 0x31e   :  { %v1324_v14 = vpop.f32.mrf.mxu1 }
 0x325   :  { %v1552_v56 = vpop.eup %1551 }
 0x326   :  { %v1050_v35 = vrot.slane %v1552_v56, %v1049_v33 }
 0x328   :  { %v1051_v37 = vmul.f32 %v1050_v35, %v1036_v19 }
 0x32a   :  { %v1084_v42 = vmul.f32 %v1055_v36, %v1051_v37  ;;  %v1085_v9 = vmul.f32 %v1059_v39, %v1051_v37  ;;  %v1086_v44 = vmul.f32 %v1063_v34, %v1051_v37  ;;  %v1087_v45 = vmul.f32 %v1067_v41, %v1051_v37 }
 0x32b   :  { %v1088_v46 = vmul.f32 %v1071_v18, %v1051_v37  ;;  %v1089_v10 = vmul.f32 %v1075_v8, %v1051_v37  ;;  %v1090_v47 = vmul.f32 %v1079_v38, %v1051_v37 }
 0x32c   :  { %v1092_v12 = vsub.f32 %v1029_v17, %v1084_v42  ;;  %v1093_v48 = vsub.f32 %v1030_v1, %v1085_v9  ;;  %v1094_v53 = vsub.f32 %v1031_v22, %v1086_v44  ;;  %v1095_v49 = vsub.f32 %v1032_v43, %v1087_v45 }
 0x32d   :  { %v1096_v50 = vsub.f32 %v1033_v30, %v1088_v46  ;;  %v1097_v51 = vsub.f32 %v1034_v55, %v1089_v10  ;;  %v1098_v52 = vsub.f32 %v2009_v32, %v1090_v47  ;;  %v1327_v32 = vld [vmem:[%s2069_s9] sm:$0xff] }
 0x32e   :  { %1124 = vxpose.xlu0.b32.start [1/8] (short) (narrow) %v1092_v12, 16 }
 0x332   :  { %1125 = vxpose.xlu0.b32.cont [2/8] (short) (narrow) %v1093_v48, 16 }
 0x336   :  { %1126 = vxpose.xlu0.b32.cont [3/8] (short) (narrow) %v1094_v53, 16 }
 0x33a   :  { %1127 = vxpose.xlu0.b32.cont [4/8] (short) (narrow) %v1095_v49, 16 }
 0x33e   :  { %1128 = vxpose.xlu0.b32.cont [5/8] (short) (narrow) %v1096_v50, 16 }
 0x342   :  { %1129 = vxpose.xlu0.b32.cont [6/8] (short) (narrow) %v1097_v51, 16 }
 0x346   :  { %1130 = vxpose.xlu0.b32.cont [7/8] (short) (narrow) %v1098_v52, 16 }
 0x34a   :  { %1131 = vxpose.xlu0.b32.end [8/8] (short) (narrow) %v1051_v37, 16 }
 0x3aa   :  { %v1140_v54 = vpop.trf.xlu0 }
 0x3ab   :  { %1473 = vmatmul.mubr.msk.f32.vlgmr.msra.gmra.mxu0 %vm1156_vm10, %v1140_v54 }
 0x3ac   :  { %1360 = vmatpush1.msra.mxu0 %v1329_v57  ;;  %1233 = vmatprep.mubr.f32.mxu0 %v1553_v13 }
 0x3ad   :  { %1361 = vmatprep.subr.mxu0 %v1328_v58 }
 0x3ae   :  { %v1141_v60 = vpop.trf.xlu0  ;;  %1362 = vmatpush1.msra.mxu0 %v1327_v32 }
 0x3af   :  { %1474 = vmatmul.mubr.msk.f32.gmra.mxu0 %vm1156_vm10, %v1141_v60 }
 0x3b0   :  { %1395 = vmatprep.mubr.f32.mxu0 %v1553_v13 }
 0x3b3   :  { %1477 = vmatmul.mubr.msk.f32.vlgmr.msra.gmra.mxu0 %vm46_vm0, %v1641_v28 }
 0x3b4   :  { %1401 = vmatprep.mubr.f32.mxu0 %v1553_v13  ;;  %v1417_v13 = vld [vmem:[%s2070_s1 + $0x8] sm:$0xff]  ;;  %s1525_s1 = spop %1524 }
 0x3b5   :  { %s1440_s18 = smul.f32 0.00390625, %s1525_s1 }
 0x3b7   :  { %1478 = vmatmul.mubr.msk.f32.gmra.mxu0 %vm46_vm0, %v1637_v23 }
 0x46b   :  { %v1229_v31 = vpop.f32.mrf.mxu0 }
 0x46c   :  { %v1408_v3 = vmul.f32 %v1316_v59, %v1229_v31 }
 0x46d   :  { %v1231_v62 = vpop.f32.mrf.mxu0 }
 0x46e   :  { %v1409_v16 = vmul.f32 %v1318_v2, %v1231_v62 }
 0x46f   :  { %v1235_v7 = vpop.f32.mrf.mxu0 }
 0x470   :  { %v1410_v23 = vmul.f32 %v1322_v4, %v1235_v7 }
 0x471   :  { %v1237_v6 = vpop.f32.mrf.mxu0 }
 0x472   :  { %v1411_v22 = vmul.f32 %v1324_v14, %v1237_v6 }
 0x473   :  { %v1397_v5 = vpop.f32.mrf.mxu0 }
 0x474   :  { %v1412_v28 = vmul.f32 %v1408_v3, %v1397_v5 }
 0x475   :  { %v1399_v40 = vpop.f32.mrf.mxu0 }
 0x476   :  { %v1420_v17 = vsub.f32 %v1412_v28, %v1416_v15  ;;  %v1413_v19 = vmul.f32 %v1409_v16, %v1399_v40 }
 0x477   :  { %v1403_v1 = vpop.f32.mrf.mxu0 }
 0x478   :  { %v1421_v25 = vsub.f32 %v1413_v19, %v1417_v13  ;;  %v1414_v63 = vmul.f32 %v1410_v23, %v1403_v1  ;;  %v1424_v20 = vmul.f32 %v1420_v17, %v1420_v17 }
 0x479   :  { %v1405_v61 = vpop.f32.mrf.mxu0 }
 0x47a   :  { %v1425_v27 = vmul.f32 %v1421_v25, %v1421_v25  ;;  %v1422_v43 = vsub.f32 %v1414_v63, %v1418_v29  ;;  %v1415_v24 = vmul.f32 %v1411_v22, %v1405_v61 }
 0x47c   :  { %v1428_v21 = vadd.f32 %v1425_v27, %v1424_v20  ;;  %v1426_v26 = vmul.f32 %v1422_v43, %v1422_v43  ;;  %v1423_v30 = vsub.f32 %v1415_v24, %v1419_v11 }
 0x47e   :  { %v1427_v0 = vmul.f32 %v1423_v30, %v1423_v30  ;;  %v1429_v55 = vadd.f32 %v1428_v21, %v1426_v26 }
 0x480   :  { %v1430_v33 = vadd.f32 %v1429_v55, %v1427_v0 }
 0x482   :  { %1431 = vadd.xlane.f32.xlu1 %v1430_v33 }
 0x50b   :  { %v1432_v56 = vpop.xlane.xlu1 %1431 }
 0x50c   :  { %v1433_v35 = vrot.slane %v1432_v56, 4 }
 0x50e   :  { %v1434_v36 = vadd.f32 %v1433_v35, %v1432_v56 }
 0x510   :  { %v1435_v37 = vrot.slane %v1434_v36, 2 }
 0x512   :  { %v1436_v39 = vadd.f32 %v1435_v37, %v1434_v36 }
 0x514   :  { %v1437_v34 = vrot.slane %v1436_v39, 1 }
 0x516   :  { %v1438_v41 = vadd.f32 %v1437_v34, %v1436_v39 }
 0x518   :  { %1526 = vpush %v1438_v41 }
 0x549   :  { %s1527_s19 = spop %1526 }
 0x54a   :  { %s1441_s20 = smul.f32 0.0625, %s1527_s19 }
 0x54c   :  { %s1442_s21 = sadd.f32 %s1441_s20, %s1440_s18 }
 0x54e   :  { %v1443_v18 = vstv %s1442_s21 }
 0x54f   :  { %1444 = vst [vmem:[%s2071_s10] sm:$0xff] %v1443_v18 }

</bundles_post_ra>
